<compile_context>
chip_gen: v7x
topology: tpu7x:2x2x1
jax: 0.10.0
libtpu: 0.0.40
codegen_flags: <defaults>
</compile_context>

<pallas_src>
import jax
import jax.numpy as jnp
from jax import lax
from jax.experimental import pallas as pl
from jax.experimental.pallas import tpu as pltpu


def gru_encoder_kernel(tok_ref, emb_hbm, wih_ref, whh_ref, bih_ref, bhh_ref,
                       out_ref, ebuf, gi_ref, sem):
    # tok_ref : SMEM [T, B] int32 (scalar prefetch)      emb_hbm : HBM [V, E] f32
    # wih_ref : VMEM [E, 3H] bf16                        whh_ref : VMEM [H, 3H] bf16
    # bih_ref / bhh_ref : VMEM [1, 3H] f32               out_ref : VMEM [T, bb, H] f32
    # ebuf    : VMEM [T*bb, E] f32 (gathered rows)       gi_ref  : VMEM [T*bb, 3H] f32
    T, bb, H = out_ref.shape
    n_rows = T * bb
    col0 = pl.program_id(0) * bb         # first batch column handled by this program

    # ---- Embedding: DMA-gather the needed rows from the HBM-resident f32 table ----
    # Row i of ebuf holds the embedding of token x[i // bb, col0 + i % bb] (exact lookup).
    copies = []
    for i in range(n_rows):              # static unroll: T*bb is small at these shapes
        t, j = divmod(i, bb)
        tok = tok_ref[t, col0 + j]       # SMEM scalar read feeds the DMA descriptor
        cp = pltpu.make_async_copy(emb_hbm.at[pl.ds(tok, 1), :],
                                   ebuf.at[pl.ds(i, 1), :],
                                   sem)
        cp.start()
        copies.append(cp)
    for cp in copies:
        cp.wait()
    # TODO(synk): at realistic vocab / seq sizes, deduplicate repeated tokens and batch rows
    # per DMA instead of one 1-row DMA per (t, b); out-of-range ids would trip the DMA
    # bounds check here (nn.Embedding would raise too).

    # ---- Input-side projection for ALL T*bb rows in one fused, lane-dense MXU contraction ----
    emb_bf = ebuf[...].astype(jnp.bfloat16)                           # [T*bb, E]
    gi_ref[...] = (jnp.dot(emb_bf, wih_ref[...],
                           preferred_element_type=jnp.float32)
                   + bih_ref[...])                                    # [T*bb, 3H] f32, staged in VMEM

    # ---- Hoist loop-invariant recurrent weight load / bias broadcast ----
    whh = whh_ref[...]                                                # [H, 3H] bf16
    bhh = jnp.broadcast_to(bhh_ref[...], (bb, 3 * H))                 # [bb, 3H] f32

    # ---- Sequential GRU recurrence: ONE bf16 MXU matmul per step, h carried in vregs ----
    h = jnp.zeros((bb, H), jnp.float32)          # PyTorch default h0 = zeros
    for t in range(T):                           # static unroll: T is tiny & known at trace time
        gh = jnp.dot(h.astype(jnp.bfloat16), whh,
                     preferred_element_type=jnp.float32) + bhh        # [bb, 3H] f32
        gi = gi_ref[pl.ds(t * bb, bb), :]                             # [bb, 3H] f32
        r = jax.nn.sigmoid(gi[:, :H] + gh[:, :H])
        z = jax.nn.sigmoid(gi[:, H:2 * H] + gh[:, H:2 * H])
        n = jnp.tanh(gi[:, 2 * H:] + r * gh[:, 2 * H:])
        h = (1.0 - z) * n + z * h
        out_ref[t, :, :] = h.astype(out_ref.dtype)   # per-step store overlaps writeback
    # TODO(synk): for large T, switch to lax.fori_loop(..., unroll=k) to bound live ranges,
    # and fold (bb*H) into the lane axis when H is not a multiple of 128 (lane-dense stores).


def rnn_encoder_forward(x, emb_table, w_ih, w_hh, b_ih, b_hh, *, batch_block=None):
    """x: [T, B] int token ids.  Weights in PyTorch layout:
       emb_table [V, E], w_ih [3H, E], w_hh [3H, H], b_ih / b_hh [3H]."""
    T, B = x.shape
    V, E = emb_table.shape
    H = w_hh.shape[1]

    # Batch-parallel grid: at realistic B pick batch_block as a multiple of 8 (and give the
    # grid >= 2 blocks on v7x so both TensorCores get work).  One block at this toy size.
    if batch_block is None:
        batch_block = B
    num_blocks = pl.cdiv(B, batch_block)

    # Lane-packed gate weights: columns 0:H = r, H:2H = z, 2H:3H = n  (== plain transposes).
    # Parallel-path W_ih and serial-path W_hh both go bf16 for the MXU (f32 accumulate);
    # biases stay f32; the embedding table stays f32 in HBM (exact gather).
    w_ih_p = w_ih.T.astype(jnp.bfloat16)               # [E, 3H]
    w_hh_p = w_hh.T.astype(jnp.bfloat16)               # [H, 3H]
    b_ih_p = b_ih.reshape(1, 3 * H).astype(jnp.float32)
    b_hh_p = b_hh.reshape(1, 3 * H).astype(jnp.float32)

    grid_spec = pltpu.PrefetchScalarGridSpec(
        num_scalar_prefetch=1,                          # token ids -> SMEM
        grid=(num_blocks,),
        in_specs=[
            pl.BlockSpec(memory_space=pl.ANY),          # embedding table stays HBM-resident
            pl.BlockSpec((E, 3 * H), lambda b, tok: (0, 0)),
            pl.BlockSpec((H, 3 * H), lambda b, tok: (0, 0)),
            pl.BlockSpec((1, 3 * H), lambda b, tok: (0, 0)),
            pl.BlockSpec((1, 3 * H), lambda b, tok: (0, 0)),
        ],
        out_specs=pl.BlockSpec((T, batch_block, H), lambda b, tok: (0, b, 0)),
        scratch_shapes=[
            pltpu.VMEM((T * batch_block, E), jnp.float32),       # gathered embedding rows
            pltpu.VMEM((T * batch_block, 3 * H), jnp.float32),   # staged input projections
            pltpu.SemaphoreType.DMA,                             # gather-DMA completion
        ],
    )

    output = pl.pallas_call(
        gru_encoder_kernel,
        out_shape=jax.ShapeDtypeStruct((T, B, H), jnp.float32),
        grid_spec=grid_spec,
        compiler_params=pltpu.CompilerParams(
            dimension_semantics=("parallel",),          # batch blocks -> v7x megacore
            vmem_limit_bytes=32 * 1024 * 1024,          # small resident footprint now that
        ),                                              # the table lives in HBM
    )(x.astype(jnp.int32), emb_table.astype(jnp.float32),
      w_ih_p, w_hh_p, b_ih_p, b_hh_p)

    hidden = output[-1:]   # h_T == last output step; avoids a second kernel output + store
    return output, hidden


def reference_forward(x, emb_table, w_ih, w_hh, b_ih, b_hh):
    """Pure-JAX f32 reference matching torch.nn.GRU semantics (for verification)."""
    T, B = x.shape
    H = w_hh.shape[1]
    emb = emb_table[x]                                        # [T, B, E]
    gi_all = jnp.einsum('tbe,ge->tbg', emb, w_ih) + b_ih      # [T, B, 3H]

    def step(h, gi_t):
        gh = h @ w_hh.T + b_hh
        i_r, i_z, i_n = gi_t[:, :H], gi_t[:, H:2 * H], gi_t[:, 2 * H:]
        h_r, h_z, h_n = gh[:, :H], gh[:, H:2 * H], gh[:, 2 * H:]
        r = jax.nn.sigmoid(i_r + h_r)
        z = jax.nn.sigmoid(i_z + h_z)
        n = jnp.tanh(i_n + r * h_n)
        h_new = (1.0 - z) * n + z * h
        return h_new, h_new

    h0 = jnp.zeros((B, H), jnp.float32)
    h_last, outs = lax.scan(step, h0, gi_all)
    return outs, h_last[None]


if __name__ == "__main__":
    # Small shapes consistent with the module: seq=8, batch=2, vocab=16,
    # embedding_dim=16, hidden_units=32.
    T, B, V, E, H = 8, 2, 16, 16, 32

    key = jax.random.PRNGKey(0)
    k_tok, k_emb, k_wih, k_whh, k_bih, k_bhh = jax.random.split(key, 6)

    x = jax.random.randint(k_tok, (T, B), 0, V, dtype=jnp.int32)

    # Deterministic parameter init (shapes match nn.Embedding / nn.GRU):
    emb_table = jax.random.normal(k_emb, (V, E), jnp.float32)                    # embedding.weight
    bound = 1.0 / jnp.sqrt(jnp.float32(H))
    w_ih = jax.random.uniform(k_wih, (3 * H, E), jnp.float32, -bound, bound)     # gru.weight_ih_l0
    w_hh = jax.random.uniform(k_whh, (3 * H, H), jnp.float32, -bound, bound)     # gru.weight_hh_l0
    b_ih = jax.random.uniform(k_bih, (3 * H,), jnp.float32, -bound, bound)       # gru.bias_ih_l0
    b_hh = jax.random.uniform(k_bhh, (3 * H,), jnp.float32, -bound, bound)       # gru.bias_hh_l0

    output, hidden = rnn_encoder_forward(x, emb_table, w_ih, w_hh, b_ih, b_hh)
    output = jax.block_until_ready(output)
    hidden = jax.block_until_ready(hidden)

    ref_out, ref_hid = reference_forward(x, emb_table, w_ih, w_hh, b_ih, b_hh)

    assert output.shape == (T, B, H)
    assert hidden.shape == (1, B, H)
    # bf16 MXU on both the input projection and the recurrent path => compare vs the f32
    # reference at bf16-level tolerance.
    assert jnp.allclose(output, ref_out, atol=4e-2, rtol=4e-2)
    assert jnp.allclose(hidden, ref_hid, atol=4e-2, rtol=4e-2)

    print("KERNEL_OK")
</pallas_src>

<mosaic_0001>
module attributes {stable_mosaic.version = 11 : i64} {
  func.func @gru_encoder_kernel(%arg0: i32, %arg1: memref<8x2xi32, #tpu.memory_space<smem>>, %arg2: memref<16x16xf32, #tpu.memory_space<any>>, %arg3: memref<16x96xbf16, #tpu.memory_space<vmem>>, %arg4: memref<32x96xbf16, #tpu.memory_space<vmem>>, %arg5: memref<1x96xf32, #tpu.memory_space<vmem>>, %arg6: memref<1x96xf32, #tpu.memory_space<vmem>>, %arg7: memref<8x2x32xf32, #tpu.memory_space<vmem>>, %arg8: memref<16x16xf32, #tpu.memory_space<vmem>>, %arg9: memref<16x96xf32, #tpu.memory_space<vmem>>, %arg10: memref<!tpu.dma_semaphore, #tpu.memory_space<semaphore_mem>>) attributes {dimension_semantics = [#tpu.dimension_semantics<parallel>], iteration_bounds = array<i64: 1>, scalar_prefetch = 1 : i64, scratch_operands = 3 : i64, tpu.core_type = #tpu.core_type<tc>, window_params = [{}, {pipeline_mode = #tpu.pipeline_mode<synchronous>, transform_indices = @transform_1, window_bounds = array<i64: 16, 96>}, {pipeline_mode = #tpu.pipeline_mode<synchronous>, transform_indices = @transform_2, window_bounds = array<i64: 32, 96>}, {pipeline_mode = #tpu.pipeline_mode<synchronous>, transform_indices = @transform_3, window_bounds = array<i64: 1, 96>}, {pipeline_mode = #tpu.pipeline_mode<synchronous>, transform_indices = @transform_4, window_bounds = array<i64: 1, 96>}, {transform_indices = @transform_5, window_bounds = array<i64: 8, 2, 32>}]} {
    %c2_i32 = arith.constant 2 : i32
    %0 = arith.muli %arg0, %c2_i32 : i32
    %c0_i32 = arith.constant 0 : i32
    %1 = arith.addi %0, %c0_i32 : i32
    %c0 = arith.constant 0 : index
    %2 = arith.index_cast %1 : i32 to index
    %3 = memref.load %arg1[%c0, %2] : memref<8x2xi32, #tpu.memory_space<smem>>
    %c0_i32_0 = arith.constant 0 : i32
    %4 = tpu.memref_slice %arg2[%3, %c0_i32_0] : memref<16x16xf32, #tpu.memory_space<any>> -> memref<1x16xf32, #tpu.memory_space<any>>
    %c0_i32_1 = arith.constant 0 : i32
    %c0_i32_2 = arith.constant 0 : i32
    %5 = tpu.memref_slice %arg8[%c0_i32_1, %c0_i32_2] : memref<16x16xf32, #tpu.memory_space<vmem>> -> memref<1x16xf32, #tpu.memory_space<vmem>>
    tpu.enqueue_dma source(%4 : memref<1x16xf32, #tpu.memory_space<any>>) target(%5 : memref<1x16xf32, #tpu.memory_space<vmem>>) target_semaphore(%arg10 : memref<!tpu.dma_semaphore, #tpu.memory_space<semaphore_mem>>)
    %c1_i32 = arith.constant 1 : i32
    %6 = arith.addi %0, %c1_i32 : i32
    %c0_3 = arith.constant 0 : index
    %7 = arith.index_cast %6 : i32 to index
    %8 = memref.load %arg1[%c0_3, %7] : memref<8x2xi32, #tpu.memory_space<smem>>
    %c0_i32_4 = arith.constant 0 : i32
    %9 = tpu.memref_slice %arg2[%8, %c0_i32_4] : memref<16x16xf32, #tpu.memory_space<any>> -> memref<1x16xf32, #tpu.memory_space<any>>
    %c1_i32_5 = arith.constant 1 : i32
    %c0_i32_6 = arith.constant 0 : i32
    %10 = tpu.memref_slice %arg8[%c1_i32_5, %c0_i32_6] : memref<16x16xf32, #tpu.memory_space<vmem>> -> memref<1x16xf32, #tpu.memory_space<vmem>>
    tpu.enqueue_dma source(%9 : memref<1x16xf32, #tpu.memory_space<any>>) target(%10 : memref<1x16xf32, #tpu.memory_space<vmem>>) target_semaphore(%arg10 : memref<!tpu.dma_semaphore, #tpu.memory_space<semaphore_mem>>)
    %c0_i32_7 = arith.constant 0 : i32
    %11 = arith.addi %0, %c0_i32_7 : i32
    %c1 = arith.constant 1 : index
    %12 = arith.index_cast %11 : i32 to index
    %13 = memref.load %arg1[%c1, %12] : memref<8x2xi32, #tpu.memory_space<smem>>
    %c0_i32_8 = arith.constant 0 : i32
    %14 = tpu.memref_slice %arg2[%13, %c0_i32_8] : memref<16x16xf32, #tpu.memory_space<any>> -> memref<1x16xf32, #tpu.memory_space<any>>
    %c2_i32_9 = arith.constant 2 : i32
    %c0_i32_10 = arith.constant 0 : i32
    %15 = tpu.memref_slice %arg8[%c2_i32_9, %c0_i32_10] : memref<16x16xf32, #tpu.memory_space<vmem>> -> memref<1x16xf32, #tpu.memory_space<vmem>>
    tpu.enqueue_dma source(%14 : memref<1x16xf32, #tpu.memory_space<any>>) target(%15 : memref<1x16xf32, #tpu.memory_space<vmem>>) target_semaphore(%arg10 : memref<!tpu.dma_semaphore, #tpu.memory_space<semaphore_mem>>)
    %c1_i32_11 = arith.constant 1 : i32
    %16 = arith.addi %0, %c1_i32_11 : i32
    %c1_12 = arith.constant 1 : index
    %17 = arith.index_cast %16 : i32 to index
    %18 = memref.load %arg1[%c1_12, %17] : memref<8x2xi32, #tpu.memory_space<smem>>
    %c0_i32_13 = arith.constant 0 : i32
    %19 = tpu.memref_slice %arg2[%18, %c0_i32_13] : memref<16x16xf32, #tpu.memory_space<any>> -> memref<1x16xf32, #tpu.memory_space<any>>
    %c3_i32 = arith.constant 3 : i32
    %c0_i32_14 = arith.constant 0 : i32
    %20 = tpu.memref_slice %arg8[%c3_i32, %c0_i32_14] : memref<16x16xf32, #tpu.memory_space<vmem>> -> memref<1x16xf32, #tpu.memory_space<vmem>>
    tpu.enqueue_dma source(%19 : memref<1x16xf32, #tpu.memory_space<any>>) target(%20 : memref<1x16xf32, #tpu.memory_space<vmem>>) target_semaphore(%arg10 : memref<!tpu.dma_semaphore, #tpu.memory_space<semaphore_mem>>)
    %c0_i32_15 = arith.constant 0 : i32
    %21 = arith.addi %0, %c0_i32_15 : i32
    %c2 = arith.constant 2 : index
    %22 = arith.index_cast %21 : i32 to index
    %23 = memref.load %arg1[%c2, %22] : memref<8x2xi32, #tpu.memory_space<smem>>
    %c0_i32_16 = arith.constant 0 : i32
    %24 = tpu.memref_slice %arg2[%23, %c0_i32_16] : memref<16x16xf32, #tpu.memory_space<any>> -> memref<1x16xf32, #tpu.memory_space<any>>
    %c4_i32 = arith.constant 4 : i32
    %c0_i32_17 = arith.constant 0 : i32
    %25 = tpu.memref_slice %arg8[%c4_i32, %c0_i32_17] : memref<16x16xf32, #tpu.memory_space<vmem>> -> memref<1x16xf32, #tpu.memory_space<vmem>>
    tpu.enqueue_dma source(%24 : memref<1x16xf32, #tpu.memory_space<any>>) target(%25 : memref<1x16xf32, #tpu.memory_space<vmem>>) target_semaphore(%arg10 : memref<!tpu.dma_semaphore, #tpu.memory_space<semaphore_mem>>)
    %c1_i32_18 = arith.constant 1 : i32
    %26 = arith.addi %0, %c1_i32_18 : i32
    %c2_19 = arith.constant 2 : index
    %27 = arith.index_cast %26 : i32 to index
    %28 = memref.load %arg1[%c2_19, %27] : memref<8x2xi32, #tpu.memory_space<smem>>
    %c0_i32_20 = arith.constant 0 : i32
    %29 = tpu.memref_slice %arg2[%28, %c0_i32_20] : memref<16x16xf32, #tpu.memory_space<any>> -> memref<1x16xf32, #tpu.memory_space<any>>
    %c5_i32 = arith.constant 5 : i32
    %c0_i32_21 = arith.constant 0 : i32
    %30 = tpu.memref_slice %arg8[%c5_i32, %c0_i32_21] : memref<16x16xf32, #tpu.memory_space<vmem>> -> memref<1x16xf32, #tpu.memory_space<vmem>>
    tpu.enqueue_dma source(%29 : memref<1x16xf32, #tpu.memory_space<any>>) target(%30 : memref<1x16xf32, #tpu.memory_space<vmem>>) target_semaphore(%arg10 : memref<!tpu.dma_semaphore, #tpu.memory_space<semaphore_mem>>)
    %c0_i32_22 = arith.constant 0 : i32
    %31 = arith.addi %0, %c0_i32_22 : i32
    %c3 = arith.constant 3 : index
    %32 = arith.index_cast %31 : i32 to index
    %33 = memref.load %arg1[%c3, %32] : memref<8x2xi32, #tpu.memory_space<smem>>
    %c0_i32_23 = arith.constant 0 : i32
    %34 = tpu.memref_slice %arg2[%33, %c0_i32_23] : memref<16x16xf32, #tpu.memory_space<any>> -> memref<1x16xf32, #tpu.memory_space<any>>
    %c6_i32 = arith.constant 6 : i32
    %c0_i32_24 = arith.constant 0 : i32
    %35 = tpu.memref_slice %arg8[%c6_i32, %c0_i32_24] : memref<16x16xf32, #tpu.memory_space<vmem>> -> memref<1x16xf32, #tpu.memory_space<vmem>>
    tpu.enqueue_dma source(%34 : memref<1x16xf32, #tpu.memory_space<any>>) target(%35 : memref<1x16xf32, #tpu.memory_space<vmem>>) target_semaphore(%arg10 : memref<!tpu.dma_semaphore, #tpu.memory_space<semaphore_mem>>)
    %c1_i32_25 = arith.constant 1 : i32
    %36 = arith.addi %0, %c1_i32_25 : i32
    %c3_26 = arith.constant 3 : index
    %37 = arith.index_cast %36 : i32 to index
    %38 = memref.load %arg1[%c3_26, %37] : memref<8x2xi32, #tpu.memory_space<smem>>
    %c0_i32_27 = arith.constant 0 : i32
    %39 = tpu.memref_slice %arg2[%38, %c0_i32_27] : memref<16x16xf32, #tpu.memory_space<any>> -> memref<1x16xf32, #tpu.memory_space<any>>
    %c7_i32 = arith.constant 7 : i32
    %c0_i32_28 = arith.constant 0 : i32
    %40 = tpu.memref_slice %arg8[%c7_i32, %c0_i32_28] : memref<16x16xf32, #tpu.memory_space<vmem>> -> memref<1x16xf32, #tpu.memory_space<vmem>>
    tpu.enqueue_dma source(%39 : memref<1x16xf32, #tpu.memory_space<any>>) target(%40 : memref<1x16xf32, #tpu.memory_space<vmem>>) target_semaphore(%arg10 : memref<!tpu.dma_semaphore, #tpu.memory_space<semaphore_mem>>)
    %c0_i32_29 = arith.constant 0 : i32
    %41 = arith.addi %0, %c0_i32_29 : i32
    %c4 = arith.constant 4 : index
    %42 = arith.index_cast %41 : i32 to index
    %43 = memref.load %arg1[%c4, %42] : memref<8x2xi32, #tpu.memory_space<smem>>
    %c0_i32_30 = arith.constant 0 : i32
    %44 = tpu.memref_slice %arg2[%43, %c0_i32_30] : memref<16x16xf32, #tpu.memory_space<any>> -> memref<1x16xf32, #tpu.memory_space<any>>
    %c8_i32 = arith.constant 8 : i32
    %c0_i32_31 = arith.constant 0 : i32
    %45 = tpu.memref_slice %arg8[%c8_i32, %c0_i32_31] : memref<16x16xf32, #tpu.memory_space<vmem>> -> memref<1x16xf32, #tpu.memory_space<vmem>>
    tpu.enqueue_dma source(%44 : memref<1x16xf32, #tpu.memory_space<any>>) target(%45 : memref<1x16xf32, #tpu.memory_space<vmem>>) target_semaphore(%arg10 : memref<!tpu.dma_semaphore, #tpu.memory_space<semaphore_mem>>)
    %c1_i32_32 = arith.constant 1 : i32
    %46 = arith.addi %0, %c1_i32_32 : i32
    %c4_33 = arith.constant 4 : index
    %47 = arith.index_cast %46 : i32 to index
    %48 = memref.load %arg1[%c4_33, %47] : memref<8x2xi32, #tpu.memory_space<smem>>
    %c0_i32_34 = arith.constant 0 : i32
    %49 = tpu.memref_slice %arg2[%48, %c0_i32_34] : memref<16x16xf32, #tpu.memory_space<any>> -> memref<1x16xf32, #tpu.memory_space<any>>
    %c9_i32 = arith.constant 9 : i32
    %c0_i32_35 = arith.constant 0 : i32
    %50 = tpu.memref_slice %arg8[%c9_i32, %c0_i32_35] : memref<16x16xf32, #tpu.memory_space<vmem>> -> memref<1x16xf32, #tpu.memory_space<vmem>>
    tpu.enqueue_dma source(%49 : memref<1x16xf32, #tpu.memory_space<any>>) target(%50 : memref<1x16xf32, #tpu.memory_space<vmem>>) target_semaphore(%arg10 : memref<!tpu.dma_semaphore, #tpu.memory_space<semaphore_mem>>)
    %c0_i32_36 = arith.constant 0 : i32
    %51 = arith.addi %0, %c0_i32_36 : i32
    %c5 = arith.constant 5 : index
    %52 = arith.index_cast %51 : i32 to index
    %53 = memref.load %arg1[%c5, %52] : memref<8x2xi32, #tpu.memory_space<smem>>
    %c0_i32_37 = arith.constant 0 : i32
    %54 = tpu.memref_slice %arg2[%53, %c0_i32_37] : memref<16x16xf32, #tpu.memory_space<any>> -> memref<1x16xf32, #tpu.memory_space<any>>
    %c10_i32 = arith.constant 10 : i32
    %c0_i32_38 = arith.constant 0 : i32
    %55 = tpu.memref_slice %arg8[%c10_i32, %c0_i32_38] : memref<16x16xf32, #tpu.memory_space<vmem>> -> memref<1x16xf32, #tpu.memory_space<vmem>>
    tpu.enqueue_dma source(%54 : memref<1x16xf32, #tpu.memory_space<any>>) target(%55 : memref<1x16xf32, #tpu.memory_space<vmem>>) target_semaphore(%arg10 : memref<!tpu.dma_semaphore, #tpu.memory_space<semaphore_mem>>)
    %c1_i32_39 = arith.constant 1 : i32
    %56 = arith.addi %0, %c1_i32_39 : i32
    %c5_40 = arith.constant 5 : index
    %57 = arith.index_cast %56 : i32 to index
    %58 = memref.load %arg1[%c5_40, %57] : memref<8x2xi32, #tpu.memory_space<smem>>
    %c0_i32_41 = arith.constant 0 : i32
    %59 = tpu.memref_slice %arg2[%58, %c0_i32_41] : memref<16x16xf32, #tpu.memory_space<any>> -> memref<1x16xf32, #tpu.memory_space<any>>
    %c11_i32 = arith.constant 11 : i32
    %c0_i32_42 = arith.constant 0 : i32
    %60 = tpu.memref_slice %arg8[%c11_i32, %c0_i32_42] : memref<16x16xf32, #tpu.memory_space<vmem>> -> memref<1x16xf32, #tpu.memory_space<vmem>>
    tpu.enqueue_dma source(%59 : memref<1x16xf32, #tpu.memory_space<any>>) target(%60 : memref<1x16xf32, #tpu.memory_space<vmem>>) target_semaphore(%arg10 : memref<!tpu.dma_semaphore, #tpu.memory_space<semaphore_mem>>)
    %c0_i32_43 = arith.constant 0 : i32
    %61 = arith.addi %0, %c0_i32_43 : i32
    %c6 = arith.constant 6 : index
    %62 = arith.index_cast %61 : i32 to index
    %63 = memref.load %arg1[%c6, %62] : memref<8x2xi32, #tpu.memory_space<smem>>
    %c0_i32_44 = arith.constant 0 : i32
    %64 = tpu.memref_slice %arg2[%63, %c0_i32_44] : memref<16x16xf32, #tpu.memory_space<any>> -> memref<1x16xf32, #tpu.memory_space<any>>
    %c12_i32 = arith.constant 12 : i32
    %c0_i32_45 = arith.constant 0 : i32
    %65 = tpu.memref_slice %arg8[%c12_i32, %c0_i32_45] : memref<16x16xf32, #tpu.memory_space<vmem>> -> memref<1x16xf32, #tpu.memory_space<vmem>>
    tpu.enqueue_dma source(%64 : memref<1x16xf32, #tpu.memory_space<any>>) target(%65 : memref<1x16xf32, #tpu.memory_space<vmem>>) target_semaphore(%arg10 : memref<!tpu.dma_semaphore, #tpu.memory_space<semaphore_mem>>)
    %c1_i32_46 = arith.constant 1 : i32
    %66 = arith.addi %0, %c1_i32_46 : i32
    %c6_47 = arith.constant 6 : index
    %67 = arith.index_cast %66 : i32 to index
    %68 = memref.load %arg1[%c6_47, %67] : memref<8x2xi32, #tpu.memory_space<smem>>
    %c0_i32_48 = arith.constant 0 : i32
    %69 = tpu.memref_slice %arg2[%68, %c0_i32_48] : memref<16x16xf32, #tpu.memory_space<any>> -> memref<1x16xf32, #tpu.memory_space<any>>
    %c13_i32 = arith.constant 13 : i32
    %c0_i32_49 = arith.constant 0 : i32
    %70 = tpu.memref_slice %arg8[%c13_i32, %c0_i32_49] : memref<16x16xf32, #tpu.memory_space<vmem>> -> memref<1x16xf32, #tpu.memory_space<vmem>>
    tpu.enqueue_dma source(%69 : memref<1x16xf32, #tpu.memory_space<any>>) target(%70 : memref<1x16xf32, #tpu.memory_space<vmem>>) target_semaphore(%arg10 : memref<!tpu.dma_semaphore, #tpu.memory_space<semaphore_mem>>)
    %c0_i32_50 = arith.constant 0 : i32
    %71 = arith.addi %0, %c0_i32_50 : i32
    %c7 = arith.constant 7 : index
    %72 = arith.index_cast %71 : i32 to index
    %73 = memref.load %arg1[%c7, %72] : memref<8x2xi32, #tpu.memory_space<smem>>
    %c0_i32_51 = arith.constant 0 : i32
    %74 = tpu.memref_slice %arg2[%73, %c0_i32_51] : memref<16x16xf32, #tpu.memory_space<any>> -> memref<1x16xf32, #tpu.memory_space<any>>
    %c14_i32 = arith.constant 14 : i32
    %c0_i32_52 = arith.constant 0 : i32
    %75 = tpu.memref_slice %arg8[%c14_i32, %c0_i32_52] : memref<16x16xf32, #tpu.memory_space<vmem>> -> memref<1x16xf32, #tpu.memory_space<vmem>>
    tpu.enqueue_dma source(%74 : memref<1x16xf32, #tpu.memory_space<any>>) target(%75 : memref<1x16xf32, #tpu.memory_space<vmem>>) target_semaphore(%arg10 : memref<!tpu.dma_semaphore, #tpu.memory_space<semaphore_mem>>)
    %c1_i32_53 = arith.constant 1 : i32
    %76 = arith.addi %0, %c1_i32_53 : i32
    %c7_54 = arith.constant 7 : index
    %77 = arith.index_cast %76 : i32 to index
    %78 = memref.load %arg1[%c7_54, %77] : memref<8x2xi32, #tpu.memory_space<smem>>
    %c0_i32_55 = arith.constant 0 : i32
    %79 = tpu.memref_slice %arg2[%78, %c0_i32_55] : memref<16x16xf32, #tpu.memory_space<any>> -> memref<1x16xf32, #tpu.memory_space<any>>
    %c15_i32 = arith.constant 15 : i32
    %c0_i32_56 = arith.constant 0 : i32
    %80 = tpu.memref_slice %arg8[%c15_i32, %c0_i32_56] : memref<16x16xf32, #tpu.memory_space<vmem>> -> memref<1x16xf32, #tpu.memory_space<vmem>>
    tpu.enqueue_dma source(%79 : memref<1x16xf32, #tpu.memory_space<any>>) target(%80 : memref<1x16xf32, #tpu.memory_space<vmem>>) target_semaphore(%arg10 : memref<!tpu.dma_semaphore, #tpu.memory_space<semaphore_mem>>)
    %c0_i32_57 = arith.constant 0 : i32
    %81 = tpu.memref_slice %arg2[%3, %c0_i32_57] : memref<16x16xf32, #tpu.memory_space<any>> -> memref<1x16xf32, #tpu.memory_space<any>>
    %c0_i32_58 = arith.constant 0 : i32
    %c0_i32_59 = arith.constant 0 : i32
    %82 = tpu.memref_slice %arg8[%c0_i32_58, %c0_i32_59] : memref<16x16xf32, #tpu.memory_space<vmem>> -> memref<1x16xf32, #tpu.memory_space<vmem>>
    tpu.wait_dma2 semaphore(%arg10 : memref<!tpu.dma_semaphore, #tpu.memory_space<semaphore_mem>>) src(%81 : memref<1x16xf32, #tpu.memory_space<any>>) dst(%82 : memref<1x16xf32, #tpu.memory_space<vmem>>)
    %c0_i32_60 = arith.constant 0 : i32
    %83 = tpu.memref_slice %arg2[%8, %c0_i32_60] : memref<16x16xf32, #tpu.memory_space<any>> -> memref<1x16xf32, #tpu.memory_space<any>>
    %c1_i32_61 = arith.constant 1 : i32
    %c0_i32_62 = arith.constant 0 : i32
    %84 = tpu.memref_slice %arg8[%c1_i32_61, %c0_i32_62] : memref<16x16xf32, #tpu.memory_space<vmem>> -> memref<1x16xf32, #tpu.memory_space<vmem>>
    tpu.wait_dma2 semaphore(%arg10 : memref<!tpu.dma_semaphore, #tpu.memory_space<semaphore_mem>>) src(%83 : memref<1x16xf32, #tpu.memory_space<any>>) dst(%84 : memref<1x16xf32, #tpu.memory_space<vmem>>)
    %c0_i32_63 = arith.constant 0 : i32
    %85 = tpu.memref_slice %arg2[%13, %c0_i32_63] : memref<16x16xf32, #tpu.memory_space<any>> -> memref<1x16xf32, #tpu.memory_space<any>>
    %c2_i32_64 = arith.constant 2 : i32
    %c0_i32_65 = arith.constant 0 : i32
    %86 = tpu.memref_slice %arg8[%c2_i32_64, %c0_i32_65] : memref<16x16xf32, #tpu.memory_space<vmem>> -> memref<1x16xf32, #tpu.memory_space<vmem>>
    tpu.wait_dma2 semaphore(%arg10 : memref<!tpu.dma_semaphore, #tpu.memory_space<semaphore_mem>>) src(%85 : memref<1x16xf32, #tpu.memory_space<any>>) dst(%86 : memref<1x16xf32, #tpu.memory_space<vmem>>)
    %c0_i32_66 = arith.constant 0 : i32
    %87 = tpu.memref_slice %arg2[%18, %c0_i32_66] : memref<16x16xf32, #tpu.memory_space<any>> -> memref<1x16xf32, #tpu.memory_space<any>>
    %c3_i32_67 = arith.constant 3 : i32
    %c0_i32_68 = arith.constant 0 : i32
    %88 = tpu.memref_slice %arg8[%c3_i32_67, %c0_i32_68] : memref<16x16xf32, #tpu.memory_space<vmem>> -> memref<1x16xf32, #tpu.memory_space<vmem>>
    tpu.wait_dma2 semaphore(%arg10 : memref<!tpu.dma_semaphore, #tpu.memory_space<semaphore_mem>>) src(%87 : memref<1x16xf32, #tpu.memory_space<any>>) dst(%88 : memref<1x16xf32, #tpu.memory_space<vmem>>)
    %c0_i32_69 = arith.constant 0 : i32
    %89 = tpu.memref_slice %arg2[%23, %c0_i32_69] : memref<16x16xf32, #tpu.memory_space<any>> -> memref<1x16xf32, #tpu.memory_space<any>>
    %c4_i32_70 = arith.constant 4 : i32
    %c0_i32_71 = arith.constant 0 : i32
    %90 = tpu.memref_slice %arg8[%c4_i32_70, %c0_i32_71] : memref<16x16xf32, #tpu.memory_space<vmem>> -> memref<1x16xf32, #tpu.memory_space<vmem>>
    tpu.wait_dma2 semaphore(%arg10 : memref<!tpu.dma_semaphore, #tpu.memory_space<semaphore_mem>>) src(%89 : memref<1x16xf32, #tpu.memory_space<any>>) dst(%90 : memref<1x16xf32, #tpu.memory_space<vmem>>)
    %c0_i32_72 = arith.constant 0 : i32
    %91 = tpu.memref_slice %arg2[%28, %c0_i32_72] : memref<16x16xf32, #tpu.memory_space<any>> -> memref<1x16xf32, #tpu.memory_space<any>>
    %c5_i32_73 = arith.constant 5 : i32
    %c0_i32_74 = arith.constant 0 : i32
    %92 = tpu.memref_slice %arg8[%c5_i32_73, %c0_i32_74] : memref<16x16xf32, #tpu.memory_space<vmem>> -> memref<1x16xf32, #tpu.memory_space<vmem>>
    tpu.wait_dma2 semaphore(%arg10 : memref<!tpu.dma_semaphore, #tpu.memory_space<semaphore_mem>>) src(%91 : memref<1x16xf32, #tpu.memory_space<any>>) dst(%92 : memref<1x16xf32, #tpu.memory_space<vmem>>)
    %c0_i32_75 = arith.constant 0 : i32
    %93 = tpu.memref_slice %arg2[%33, %c0_i32_75] : memref<16x16xf32, #tpu.memory_space<any>> -> memref<1x16xf32, #tpu.memory_space<any>>
    %c6_i32_76 = arith.constant 6 : i32
    %c0_i32_77 = arith.constant 0 : i32
    %94 = tpu.memref_slice %arg8[%c6_i32_76, %c0_i32_77] : memref<16x16xf32, #tpu.memory_space<vmem>> -> memref<1x16xf32, #tpu.memory_space<vmem>>
    tpu.wait_dma2 semaphore(%arg10 : memref<!tpu.dma_semaphore, #tpu.memory_space<semaphore_mem>>) src(%93 : memref<1x16xf32, #tpu.memory_space<any>>) dst(%94 : memref<1x16xf32, #tpu.memory_space<vmem>>)
    %c0_i32_78 = arith.constant 0 : i32
    %95 = tpu.memref_slice %arg2[%38, %c0_i32_78] : memref<16x16xf32, #tpu.memory_space<any>> -> memref<1x16xf32, #tpu.memory_space<any>>
    %c7_i32_79 = arith.constant 7 : i32
    %c0_i32_80 = arith.constant 0 : i32
    %96 = tpu.memref_slice %arg8[%c7_i32_79, %c0_i32_80] : memref<16x16xf32, #tpu.memory_space<vmem>> -> memref<1x16xf32, #tpu.memory_space<vmem>>
    tpu.wait_dma2 semaphore(%arg10 : memref<!tpu.dma_semaphore, #tpu.memory_space<semaphore_mem>>) src(%95 : memref<1x16xf32, #tpu.memory_space<any>>) dst(%96 : memref<1x16xf32, #tpu.memory_space<vmem>>)
    %c0_i32_81 = arith.constant 0 : i32
    %97 = tpu.memref_slice %arg2[%43, %c0_i32_81] : memref<16x16xf32, #tpu.memory_space<any>> -> memref<1x16xf32, #tpu.memory_space<any>>
    %c8_i32_82 = arith.constant 8 : i32
    %c0_i32_83 = arith.constant 0 : i32
    %98 = tpu.memref_slice %arg8[%c8_i32_82, %c0_i32_83] : memref<16x16xf32, #tpu.memory_space<vmem>> -> memref<1x16xf32, #tpu.memory_space<vmem>>
    tpu.wait_dma2 semaphore(%arg10 : memref<!tpu.dma_semaphore, #tpu.memory_space<semaphore_mem>>) src(%97 : memref<1x16xf32, #tpu.memory_space<any>>) dst(%98 : memref<1x16xf32, #tpu.memory_space<vmem>>)
    %c0_i32_84 = arith.constant 0 : i32
    %99 = tpu.memref_slice %arg2[%48, %c0_i32_84] : memref<16x16xf32, #tpu.memory_space<any>> -> memref<1x16xf32, #tpu.memory_space<any>>
    %c9_i32_85 = arith.constant 9 : i32
    %c0_i32_86 = arith.constant 0 : i32
    %100 = tpu.memref_slice %arg8[%c9_i32_85, %c0_i32_86] : memref<16x16xf32, #tpu.memory_space<vmem>> -> memref<1x16xf32, #tpu.memory_space<vmem>>
    tpu.wait_dma2 semaphore(%arg10 : memref<!tpu.dma_semaphore, #tpu.memory_space<semaphore_mem>>) src(%99 : memref<1x16xf32, #tpu.memory_space<any>>) dst(%100 : memref<1x16xf32, #tpu.memory_space<vmem>>)
    %c0_i32_87 = arith.constant 0 : i32
    %101 = tpu.memref_slice %arg2[%53, %c0_i32_87] : memref<16x16xf32, #tpu.memory_space<any>> -> memref<1x16xf32, #tpu.memory_space<any>>
    %c10_i32_88 = arith.constant 10 : i32
    %c0_i32_89 = arith.constant 0 : i32
    %102 = tpu.memref_slice %arg8[%c10_i32_88, %c0_i32_89] : memref<16x16xf32, #tpu.memory_space<vmem>> -> memref<1x16xf32, #tpu.memory_space<vmem>>
    tpu.wait_dma2 semaphore(%arg10 : memref<!tpu.dma_semaphore, #tpu.memory_space<semaphore_mem>>) src(%101 : memref<1x16xf32, #tpu.memory_space<any>>) dst(%102 : memref<1x16xf32, #tpu.memory_space<vmem>>)
    %c0_i32_90 = arith.constant 0 : i32
    %103 = tpu.memref_slice %arg2[%58, %c0_i32_90] : memref<16x16xf32, #tpu.memory_space<any>> -> memref<1x16xf32, #tpu.memory_space<any>>
    %c11_i32_91 = arith.constant 11 : i32
    %c0_i32_92 = arith.constant 0 : i32
    %104 = tpu.memref_slice %arg8[%c11_i32_91, %c0_i32_92] : memref<16x16xf32, #tpu.memory_space<vmem>> -> memref<1x16xf32, #tpu.memory_space<vmem>>
    tpu.wait_dma2 semaphore(%arg10 : memref<!tpu.dma_semaphore, #tpu.memory_space<semaphore_mem>>) src(%103 : memref<1x16xf32, #tpu.memory_space<any>>) dst(%104 : memref<1x16xf32, #tpu.memory_space<vmem>>)
    %c0_i32_93 = arith.constant 0 : i32
    %105 = tpu.memref_slice %arg2[%63, %c0_i32_93] : memref<16x16xf32, #tpu.memory_space<any>> -> memref<1x16xf32, #tpu.memory_space<any>>
    %c12_i32_94 = arith.constant 12 : i32
    %c0_i32_95 = arith.constant 0 : i32
    %106 = tpu.memref_slice %arg8[%c12_i32_94, %c0_i32_95] : memref<16x16xf32, #tpu.memory_space<vmem>> -> memref<1x16xf32, #tpu.memory_space<vmem>>
    tpu.wait_dma2 semaphore(%arg10 : memref<!tpu.dma_semaphore, #tpu.memory_space<semaphore_mem>>) src(%105 : memref<1x16xf32, #tpu.memory_space<any>>) dst(%106 : memref<1x16xf32, #tpu.memory_space<vmem>>)
    %c0_i32_96 = arith.constant 0 : i32
    %107 = tpu.memref_slice %arg2[%68, %c0_i32_96] : memref<16x16xf32, #tpu.memory_space<any>> -> memref<1x16xf32, #tpu.memory_space<any>>
    %c13_i32_97 = arith.constant 13 : i32
    %c0_i32_98 = arith.constant 0 : i32
    %108 = tpu.memref_slice %arg8[%c13_i32_97, %c0_i32_98] : memref<16x16xf32, #tpu.memory_space<vmem>> -> memref<1x16xf32, #tpu.memory_space<vmem>>
    tpu.wait_dma2 semaphore(%arg10 : memref<!tpu.dma_semaphore, #tpu.memory_space<semaphore_mem>>) src(%107 : memref<1x16xf32, #tpu.memory_space<any>>) dst(%108 : memref<1x16xf32, #tpu.memory_space<vmem>>)
    %c0_i32_99 = arith.constant 0 : i32
    %109 = tpu.memref_slice %arg2[%73, %c0_i32_99] : memref<16x16xf32, #tpu.memory_space<any>> -> memref<1x16xf32, #tpu.memory_space<any>>
    %c14_i32_100 = arith.constant 14 : i32
    %c0_i32_101 = arith.constant 0 : i32
    %110 = tpu.memref_slice %arg8[%c14_i32_100, %c0_i32_101] : memref<16x16xf32, #tpu.memory_space<vmem>> -> memref<1x16xf32, #tpu.memory_space<vmem>>
    tpu.wait_dma2 semaphore(%arg10 : memref<!tpu.dma_semaphore, #tpu.memory_space<semaphore_mem>>) src(%109 : memref<1x16xf32, #tpu.memory_space<any>>) dst(%110 : memref<1x16xf32, #tpu.memory_space<vmem>>)
    %c0_i32_102 = arith.constant 0 : i32
    %111 = tpu.memref_slice %arg2[%78, %c0_i32_102] : memref<16x16xf32, #tpu.memory_space<any>> -> memref<1x16xf32, #tpu.memory_space<any>>
    %c15_i32_103 = arith.constant 15 : i32
    %c0_i32_104 = arith.constant 0 : i32
    %112 = tpu.memref_slice %arg8[%c15_i32_103, %c0_i32_104] : memref<16x16xf32, #tpu.memory_space<vmem>> -> memref<1x16xf32, #tpu.memory_space<vmem>>
    tpu.wait_dma2 semaphore(%arg10 : memref<!tpu.dma_semaphore, #tpu.memory_space<semaphore_mem>>) src(%111 : memref<1x16xf32, #tpu.memory_space<any>>) dst(%112 : memref<1x16xf32, #tpu.memory_space<vmem>>)
    %c0_105 = arith.constant 0 : index
    %c0_106 = arith.constant 0 : index
    %113 = vector.load %arg8[%c0_105, %c0_106] : memref<16x16xf32, #tpu.memory_space<vmem>>, vector<16x16xf32>
    %114 = arith.truncf %113 : vector<16x16xf32> to vector<16x16xbf16>
    %c0_107 = arith.constant 0 : index
    %c0_108 = arith.constant 0 : index
    %115 = vector.load %arg3[%c0_107, %c0_108] : memref<16x96xbf16, #tpu.memory_space<vmem>>, vector<16x96xbf16>
    %cst = arith.constant dense<0.000000e+00> : vector<16x96xf32>
    %116 = tpu.matmul %114, %115, %cst {dimension_numbers = #tpu.dot_dimension_numbers<[1], [0], [0], [1], [0, 0, 1, 1], [], []>} : vector<16x16xbf16>, vector<16x96xbf16>, vector<16x96xf32> -> vector<16x96xf32>
    %c0_109 = arith.constant 0 : index
    %c0_110 = arith.constant 0 : index
    %117 = vector.load %arg5[%c0_109, %c0_110] : memref<1x96xf32, #tpu.memory_space<vmem>>, vector<1x96xf32>
    %118 = vector.broadcast %117 : vector<1x96xf32> to vector<16x96xf32>
    %119 = arith.addf %116, %118 : vector<16x96xf32>
    %c0_111 = arith.constant 0 : index
    %c0_112 = arith.constant 0 : index
    %120 = vector.load %arg9[%c0_111, %c0_112] : memref<16x96xf32, #tpu.memory_space<vmem>>, vector<16x96xf32>
    tpu.vector_store %arg9[%c0_111, %c0_112], %119 {strides = array<i32>} : memref<16x96xf32, #tpu.memory_space<vmem>>, vector<16x96xf32>,
    %c0_113 = arith.constant 0 : index
    %c0_114 = arith.constant 0 : index
    %121 = vector.load %arg4[%c0_113, %c0_114] : memref<32x96xbf16, #tpu.memory_space<vmem>>, vector<32x96xbf16>
    %c0_115 = arith.constant 0 : index
    %c0_116 = arith.constant 0 : index
    %122 = vector.load %arg6[%c0_115, %c0_116] : memref<1x96xf32, #tpu.memory_space<vmem>>, vector<1x96xf32>
    %123 = vector.shape_cast %122 : vector<1x96xf32> to vector<1x96xf32>
    %124 = vector.broadcast %123 : vector<1x96xf32> to vector<2x96xf32>
    %cst_117 = arith.constant 0.000000e+00 : f32
    %125 = vector.broadcast %cst_117 : f32 to vector<2x32xf32>
    %126 = arith.truncf %125 : vector<2x32xf32> to vector<2x32xbf16>
    %cst_118 = arith.constant dense<0.000000e+00> : vector<2x96xf32>
    %127 = tpu.matmul %126, %121, %cst_118 {dimension_numbers = #tpu.dot_dimension_numbers<[1], [0], [0], [1], [0, 0, 1, 1], [], []>} : vector<2x32xbf16>, vector<32x96xbf16>, vector<2x96xf32> -> vector<2x96xf32>
    %128 = arith.addf %127, %124 : vector<2x96xf32>
    %c0_119 = arith.constant 0 : index
    %c0_120 = arith.constant 0 : index
    %129 = vector.load %arg9[%c0_119, %c0_120] : memref<16x96xf32, #tpu.memory_space<vmem>>, vector<2x96xf32>
    %130 = vector.extract_strided_slice %129 {offsets = [0, 0], sizes = [2, 32], strides = [1, 1]} : vector<2x96xf32> to vector<2x32xf32>
    %131 = vector.extract_strided_slice %128 {offsets = [0, 0], sizes = [2, 32], strides = [1, 1]} : vector<2x96xf32> to vector<2x32xf32>
    %132 = arith.addf %130, %131 : vector<2x32xf32>
    %133 = arith.negf %132 : vector<2x32xf32>
    %134 = math.exp %133 : vector<2x32xf32>
    %cst_121 = arith.constant 1.000000e+00 : f32
    %135 = vector.broadcast %cst_121 : f32 to vector<2x32xf32>
    %136 = arith.addf %135, %134 : vector<2x32xf32>
    %137 = arith.divf %135, %136 : vector<2x32xf32>
    %138 = vector.extract_strided_slice %129 {offsets = [0, 32], sizes = [2, 32], strides = [1, 1]} : vector<2x96xf32> to vector<2x32xf32>
    %139 = vector.extract_strided_slice %128 {offsets = [0, 32], sizes = [2, 32], strides = [1, 1]} : vector<2x96xf32> to vector<2x32xf32>
    %140 = arith.addf %138, %139 : vector<2x32xf32>
    %141 = arith.negf %140 : vector<2x32xf32>
    %142 = math.exp %141 : vector<2x32xf32>
    %cst_122 = arith.constant 1.000000e+00 : f32
    %143 = vector.broadcast %cst_122 : f32 to vector<2x32xf32>
    %144 = arith.addf %143, %142 : vector<2x32xf32>
    %145 = arith.divf %143, %144 : vector<2x32xf32>
    %146 = vector.extract_strided_slice %129 {offsets = [0, 64], sizes = [2, 32], strides = [1, 1]} : vector<2x96xf32> to vector<2x32xf32>
    %147 = vector.extract_strided_slice %128 {offsets = [0, 64], sizes = [2, 32], strides = [1, 1]} : vector<2x96xf32> to vector<2x32xf32>
    %148 = arith.mulf %137, %147 : vector<2x32xf32>
    %149 = arith.addf %146, %148 : vector<2x32xf32>
    %150 = math.tanh %149 : vector<2x32xf32>
    %cst_123 = arith.constant 1.000000e+00 : f32
    %151 = vector.broadcast %cst_123 : f32 to vector<2x32xf32>
    %152 = arith.subf %151, %145 : vector<2x32xf32>
    %153 = arith.mulf %152, %150 : vector<2x32xf32>
    %154 = arith.mulf %145, %125 : vector<2x32xf32>
    %155 = arith.addf %153, %154 : vector<2x32xf32>
    %c0_124 = arith.constant 0 : index
    %c0_125 = arith.constant 0 : index
    %c0_126 = arith.constant 0 : index
    %156 = vector.load %arg7[%c0_124, %c0_125, %c0_126] : memref<8x2x32xf32, #tpu.memory_space<vmem>>, vector<1x2x32xf32>
    %157 = vector.shape_cast %156 : vector<1x2x32xf32> to vector<2x32xf32>
    %158 = vector.shape_cast %155 : vector<2x32xf32> to vector<1x2x32xf32>
    tpu.vector_store %arg7[%c0_124, %c0_125, %c0_126], %158 {strides = array<i32>} : memref<8x2x32xf32, #tpu.memory_space<vmem>>, vector<1x2x32xf32>,
    %159 = arith.truncf %155 : vector<2x32xf32> to vector<2x32xbf16>
    %cst_127 = arith.constant dense<0.000000e+00> : vector<2x96xf32>
    %160 = tpu.matmul %159, %121, %cst_127 {dimension_numbers = #tpu.dot_dimension_numbers<[1], [0], [0], [1], [0, 0, 1, 1], [], []>} : vector<2x32xbf16>, vector<32x96xbf16>, vector<2x96xf32> -> vector<2x96xf32>
    %161 = arith.addf %160, %124 : vector<2x96xf32>
    %c2_128 = arith.constant 2 : index
    %c0_129 = arith.constant 0 : index
    %162 = vector.load %arg9[%c2_128, %c0_129] : memref<16x96xf32, #tpu.memory_space<vmem>>, vector<2x96xf32>
    %163 = vector.extract_strided_slice %162 {offsets = [0, 0], sizes = [2, 32], strides = [1, 1]} : vector<2x96xf32> to vector<2x32xf32>
    %164 = vector.extract_strided_slice %161 {offsets = [0, 0], sizes = [2, 32], strides = [1, 1]} : vector<2x96xf32> to vector<2x32xf32>
    %165 = arith.addf %163, %164 : vector<2x32xf32>
    %166 = arith.negf %165 : vector<2x32xf32>
    %167 = math.exp %166 : vector<2x32xf32>
    %cst_130 = arith.constant 1.000000e+00 : f32
    %168 = vector.broadcast %cst_130 : f32 to vector<2x32xf32>
    %169 = arith.addf %168, %167 : vector<2x32xf32>
    %170 = arith.divf %168, %169 : vector<2x32xf32>
    %171 = vector.extract_strided_slice %162 {offsets = [0, 32], sizes = [2, 32], strides = [1, 1]} : vector<2x96xf32> to vector<2x32xf32>
    %172 = vector.extract_strided_slice %161 {offsets = [0, 32], sizes = [2, 32], strides = [1, 1]} : vector<2x96xf32> to vector<2x32xf32>
    %173 = arith.addf %171, %172 : vector<2x32xf32>
    %174 = arith.negf %173 : vector<2x32xf32>
    %175 = math.exp %174 : vector<2x32xf32>
    %cst_131 = arith.constant 1.000000e+00 : f32
    %176 = vector.broadcast %cst_131 : f32 to vector<2x32xf32>
    %177 = arith.addf %176, %175 : vector<2x32xf32>
    %178 = arith.divf %176, %177 : vector<2x32xf32>
    %179 = vector.extract_strided_slice %162 {offsets = [0, 64], sizes = [2, 32], strides = [1, 1]} : vector<2x96xf32> to vector<2x32xf32>
    %180 = vector.extract_strided_slice %161 {offsets = [0, 64], sizes = [2, 32], strides = [1, 1]} : vector<2x96xf32> to vector<2x32xf32>
    %181 = arith.mulf %170, %180 : vector<2x32xf32>
    %182 = arith.addf %179, %181 : vector<2x32xf32>
    %183 = math.tanh %182 : vector<2x32xf32>
    %cst_132 = arith.constant 1.000000e+00 : f32
    %184 = vector.broadcast %cst_132 : f32 to vector<2x32xf32>
    %185 = arith.subf %184, %178 : vector<2x32xf32>
    %186 = arith.mulf %185, %183 : vector<2x32xf32>
    %187 = arith.mulf %178, %155 : vector<2x32xf32>
    %188 = arith.addf %186, %187 : vector<2x32xf32>
    %c1_133 = arith.constant 1 : index
    %c0_134 = arith.constant 0 : index
    %c0_135 = arith.constant 0 : index
    %189 = vector.load %arg7[%c1_133, %c0_134, %c0_135] : memref<8x2x32xf32, #tpu.memory_space<vmem>>, vector<1x2x32xf32>
    %190 = vector.shape_cast %189 : vector<1x2x32xf32> to vector<2x32xf32>
    %191 = vector.shape_cast %188 : vector<2x32xf32> to vector<1x2x32xf32>
    tpu.vector_store %arg7[%c1_133, %c0_134, %c0_135], %191 {strides = array<i32>} : memref<8x2x32xf32, #tpu.memory_space<vmem>>, vector<1x2x32xf32>,
    %192 = arith.truncf %188 : vector<2x32xf32> to vector<2x32xbf16>
    %cst_136 = arith.constant dense<0.000000e+00> : vector<2x96xf32>
    %193 = tpu.matmul %192, %121, %cst_136 {dimension_numbers = #tpu.dot_dimension_numbers<[1], [0], [0], [1], [0, 0, 1, 1], [], []>} : vector<2x32xbf16>, vector<32x96xbf16>, vector<2x96xf32> -> vector<2x96xf32>
    %194 = arith.addf %193, %124 : vector<2x96xf32>
    %c4_137 = arith.constant 4 : index
    %c0_138 = arith.constant 0 : index
    %195 = vector.load %arg9[%c4_137, %c0_138] : memref<16x96xf32, #tpu.memory_space<vmem>>, vector<2x96xf32>
    %196 = vector.extract_strided_slice %195 {offsets = [0, 0], sizes = [2, 32], strides = [1, 1]} : vector<2x96xf32> to vector<2x32xf32>
    %197 = vector.extract_strided_slice %194 {offsets = [0, 0], sizes = [2, 32], strides = [1, 1]} : vector<2x96xf32> to vector<2x32xf32>
    %198 = arith.addf %196, %197 : vector<2x32xf32>
    %199 = arith.negf %198 : vector<2x32xf32>
    %200 = math.exp %199 : vector<2x32xf32>
    %cst_139 = arith.constant 1.000000e+00 : f32
    %201 = vector.broadcast %cst_139 : f32 to vector<2x32xf32>
    %202 = arith.addf %201, %200 : vector<2x32xf32>
    %203 = arith.divf %201, %202 : vector<2x32xf32>
    %204 = vector.extract_strided_slice %195 {offsets = [0, 32], sizes = [2, 32], strides = [1, 1]} : vector<2x96xf32> to vector<2x32xf32>
    %205 = vector.extract_strided_slice %194 {offsets = [0, 32], sizes = [2, 32], strides = [1, 1]} : vector<2x96xf32> to vector<2x32xf32>
    %206 = arith.addf %204, %205 : vector<2x32xf32>
    %207 = arith.negf %206 : vector<2x32xf32>
    %208 = math.exp %207 : vector<2x32xf32>
    %cst_140 = arith.constant 1.000000e+00 : f32
    %209 = vector.broadcast %cst_140 : f32 to vector<2x32xf32>
    %210 = arith.addf %209, %208 : vector<2x32xf32>
    %211 = arith.divf %209, %210 : vector<2x32xf32>
    %212 = vector.extract_strided_slice %195 {offsets = [0, 64], sizes = [2, 32], strides = [1, 1]} : vector<2x96xf32> to vector<2x32xf32>
    %213 = vector.extract_strided_slice %194 {offsets = [0, 64], sizes = [2, 32], strides = [1, 1]} : vector<2x96xf32> to vector<2x32xf32>
    %214 = arith.mulf %203, %213 : vector<2x32xf32>
    %215 = arith.addf %212, %214 : vector<2x32xf32>
    %216 = math.tanh %215 : vector<2x32xf32>
    %cst_141 = arith.constant 1.000000e+00 : f32
    %217 = vector.broadcast %cst_141 : f32 to vector<2x32xf32>
    %218 = arith.subf %217, %211 : vector<2x32xf32>
    %219 = arith.mulf %218, %216 : vector<2x32xf32>
    %220 = arith.mulf %211, %188 : vector<2x32xf32>
    %221 = arith.addf %219, %220 : vector<2x32xf32>
    %c2_142 = arith.constant 2 : index
    %c0_143 = arith.constant 0 : index
    %c0_144 = arith.constant 0 : index
    %222 = vector.load %arg7[%c2_142, %c0_143, %c0_144] : memref<8x2x32xf32, #tpu.memory_space<vmem>>, vector<1x2x32xf32>
    %223 = vector.shape_cast %222 : vector<1x2x32xf32> to vector<2x32xf32>
    %224 = vector.shape_cast %221 : vector<2x32xf32> to vector<1x2x32xf32>
    tpu.vector_store %arg7[%c2_142, %c0_143, %c0_144], %224 {strides = array<i32>} : memref<8x2x32xf32, #tpu.memory_space<vmem>>, vector<1x2x32xf32>,
    %225 = arith.truncf %221 : vector<2x32xf32> to vector<2x32xbf16>
    %cst_145 = arith.constant dense<0.000000e+00> : vector<2x96xf32>
    %226 = tpu.matmul %225, %121, %cst_145 {dimension_numbers = #tpu.dot_dimension_numbers<[1], [0], [0], [1], [0, 0, 1, 1], [], []>} : vector<2x32xbf16>, vector<32x96xbf16>, vector<2x96xf32> -> vector<2x96xf32>
    %227 = arith.addf %226, %124 : vector<2x96xf32>
    %c6_146 = arith.constant 6 : index
    %c0_147 = arith.constant 0 : index
    %228 = vector.load %arg9[%c6_146, %c0_147] : memref<16x96xf32, #tpu.memory_space<vmem>>, vector<2x96xf32>
    %229 = vector.extract_strided_slice %228 {offsets = [0, 0], sizes = [2, 32], strides = [1, 1]} : vector<2x96xf32> to vector<2x32xf32>
    %230 = vector.extract_strided_slice %227 {offsets = [0, 0], sizes = [2, 32], strides = [1, 1]} : vector<2x96xf32> to vector<2x32xf32>
    %231 = arith.addf %229, %230 : vector<2x32xf32>
    %232 = arith.negf %231 : vector<2x32xf32>
    %233 = math.exp %232 : vector<2x32xf32>
    %cst_148 = arith.constant 1.000000e+00 : f32
    %234 = vector.broadcast %cst_148 : f32 to vector<2x32xf32>
    %235 = arith.addf %234, %233 : vector<2x32xf32>
    %236 = arith.divf %234, %235 : vector<2x32xf32>
    %237 = vector.extract_strided_slice %228 {offsets = [0, 32], sizes = [2, 32], strides = [1, 1]} : vector<2x96xf32> to vector<2x32xf32>
    %238 = vector.extract_strided_slice %227 {offsets = [0, 32], sizes = [2, 32], strides = [1, 1]} : vector<2x96xf32> to vector<2x32xf32>
    %239 = arith.addf %237, %238 : vector<2x32xf32>
    %240 = arith.negf %239 : vector<2x32xf32>
    %241 = math.exp %240 : vector<2x32xf32>
    %cst_149 = arith.constant 1.000000e+00 : f32
    %242 = vector.broadcast %cst_149 : f32 to vector<2x32xf32>
    %243 = arith.addf %242, %241 : vector<2x32xf32>
    %244 = arith.divf %242, %243 : vector<2x32xf32>
    %245 = vector.extract_strided_slice %228 {offsets = [0, 64], sizes = [2, 32], strides = [1, 1]} : vector<2x96xf32> to vector<2x32xf32>
    %246 = vector.extract_strided_slice %227 {offsets = [0, 64], sizes = [2, 32], strides = [1, 1]} : vector<2x96xf32> to vector<2x32xf32>
    %247 = arith.mulf %236, %246 : vector<2x32xf32>
    %248 = arith.addf %245, %247 : vector<2x32xf32>
    %249 = math.tanh %248 : vector<2x32xf32>
    %cst_150 = arith.constant 1.000000e+00 : f32
    %250 = vector.broadcast %cst_150 : f32 to vector<2x32xf32>
    %251 = arith.subf %250, %244 : vector<2x32xf32>
    %252 = arith.mulf %251, %249 : vector<2x32xf32>
    %253 = arith.mulf %244, %221 : vector<2x32xf32>
    %254 = arith.addf %252, %253 : vector<2x32xf32>
    %c3_151 = arith.constant 3 : index
    %c0_152 = arith.constant 0 : index
    %c0_153 = arith.constant 0 : index
    %255 = vector.load %arg7[%c3_151, %c0_152, %c0_153] : memref<8x2x32xf32, #tpu.memory_space<vmem>>, vector<1x2x32xf32>
    %256 = vector.shape_cast %255 : vector<1x2x32xf32> to vector<2x32xf32>
    %257 = vector.shape_cast %254 : vector<2x32xf32> to vector<1x2x32xf32>
    tpu.vector_store %arg7[%c3_151, %c0_152, %c0_153], %257 {strides = array<i32>} : memref<8x2x32xf32, #tpu.memory_space<vmem>>, vector<1x2x32xf32>,
    %258 = arith.truncf %254 : vector<2x32xf32> to vector<2x32xbf16>
    %cst_154 = arith.constant dense<0.000000e+00> : vector<2x96xf32>
    %259 = tpu.matmul %258, %121, %cst_154 {dimension_numbers = #tpu.dot_dimension_numbers<[1], [0], [0], [1], [0, 0, 1, 1], [], []>} : vector<2x32xbf16>, vector<32x96xbf16>, vector<2x96xf32> -> vector<2x96xf32>
    %260 = arith.addf %259, %124 : vector<2x96xf32>
    %c8 = arith.constant 8 : index
    %c0_155 = arith.constant 0 : index
    %261 = vector.load %arg9[%c8, %c0_155] : memref<16x96xf32, #tpu.memory_space<vmem>>, vector<2x96xf32>
    %262 = vector.extract_strided_slice %261 {offsets = [0, 0], sizes = [2, 32], strides = [1, 1]} : vector<2x96xf32> to vector<2x32xf32>
    %263 = vector.extract_strided_slice %260 {offsets = [0, 0], sizes = [2, 32], strides = [1, 1]} : vector<2x96xf32> to vector<2x32xf32>
    %264 = arith.addf %262, %263 : vector<2x32xf32>
    %265 = arith.negf %264 : vector<2x32xf32>
    %266 = math.exp %265 : vector<2x32xf32>
    %cst_156 = arith.constant 1.000000e+00 : f32
    %267 = vector.broadcast %cst_156 : f32 to vector<2x32xf32>
    %268 = arith.addf %267, %266 : vector<2x32xf32>
    %269 = arith.divf %267, %268 : vector<2x32xf32>
    %270 = vector.extract_strided_slice %261 {offsets = [0, 32], sizes = [2, 32], strides = [1, 1]} : vector<2x96xf32> to vector<2x32xf32>
    %271 = vector.extract_strided_slice %260 {offsets = [0, 32], sizes = [2, 32], strides = [1, 1]} : vector<2x96xf32> to vector<2x32xf32>
    %272 = arith.addf %270, %271 : vector<2x32xf32>
    %273 = arith.negf %272 : vector<2x32xf32>
    %274 = math.exp %273 : vector<2x32xf32>
    %cst_157 = arith.constant 1.000000e+00 : f32
    %275 = vector.broadcast %cst_157 : f32 to vector<2x32xf32>
    %276 = arith.addf %275, %274 : vector<2x32xf32>
    %277 = arith.divf %275, %276 : vector<2x32xf32>
    %278 = vector.extract_strided_slice %261 {offsets = [0, 64], sizes = [2, 32], strides = [1, 1]} : vector<2x96xf32> to vector<2x32xf32>
    %279 = vector.extract_strided_slice %260 {offsets = [0, 64], sizes = [2, 32], strides = [1, 1]} : vector<2x96xf32> to vector<2x32xf32>
    %280 = arith.mulf %269, %279 : vector<2x32xf32>
    %281 = arith.addf %278, %280 : vector<2x32xf32>
    %282 = math.tanh %281 : vector<2x32xf32>
    %cst_158 = arith.constant 1.000000e+00 : f32
    %283 = vector.broadcast %cst_158 : f32 to vector<2x32xf32>
    %284 = arith.subf %283, %277 : vector<2x32xf32>
    %285 = arith.mulf %284, %282 : vector<2x32xf32>
    %286 = arith.mulf %277, %254 : vector<2x32xf32>
    %287 = arith.addf %285, %286 : vector<2x32xf32>
    %c4_159 = arith.constant 4 : index
    %c0_160 = arith.constant 0 : index
    %c0_161 = arith.constant 0 : index
    %288 = vector.load %arg7[%c4_159, %c0_160, %c0_161] : memref<8x2x32xf32, #tpu.memory_space<vmem>>, vector<1x2x32xf32>
    %289 = vector.shape_cast %288 : vector<1x2x32xf32> to vector<2x32xf32>
    %290 = vector.shape_cast %287 : vector<2x32xf32> to vector<1x2x32xf32>
    tpu.vector_store %arg7[%c4_159, %c0_160, %c0_161], %290 {strides = array<i32>} : memref<8x2x32xf32, #tpu.memory_space<vmem>>, vector<1x2x32xf32>,
    %291 = arith.truncf %287 : vector<2x32xf32> to vector<2x32xbf16>
    %cst_162 = arith.constant dense<0.000000e+00> : vector<2x96xf32>
    %292 = tpu.matmul %291, %121, %cst_162 {dimension_numbers = #tpu.dot_dimension_numbers<[1], [0], [0], [1], [0, 0, 1, 1], [], []>} : vector<2x32xbf16>, vector<32x96xbf16>, vector<2x96xf32> -> vector<2x96xf32>
    %293 = arith.addf %292, %124 : vector<2x96xf32>
    %c10 = arith.constant 10 : index
    %c0_163 = arith.constant 0 : index
    %294 = vector.load %arg9[%c10, %c0_163] : memref<16x96xf32, #tpu.memory_space<vmem>>, vector<2x96xf32>
    %295 = vector.extract_strided_slice %294 {offsets = [0, 0], sizes = [2, 32], strides = [1, 1]} : vector<2x96xf32> to vector<2x32xf32>
    %296 = vector.extract_strided_slice %293 {offsets = [0, 0], sizes = [2, 32], strides = [1, 1]} : vector<2x96xf32> to vector<2x32xf32>
    %297 = arith.addf %295, %296 : vector<2x32xf32>
    %298 = arith.negf %297 : vector<2x32xf32>
    %299 = math.exp %298 : vector<2x32xf32>
    %cst_164 = arith.constant 1.000000e+00 : f32
    %300 = vector.broadcast %cst_164 : f32 to vector<2x32xf32>
    %301 = arith.addf %300, %299 : vector<2x32xf32>
    %302 = arith.divf %300, %301 : vector<2x32xf32>
    %303 = vector.extract_strided_slice %294 {offsets = [0, 32], sizes = [2, 32], strides = [1, 1]} : vector<2x96xf32> to vector<2x32xf32>
    %304 = vector.extract_strided_slice %293 {offsets = [0, 32], sizes = [2, 32], strides = [1, 1]} : vector<2x96xf32> to vector<2x32xf32>
    %305 = arith.addf %303, %304 : vector<2x32xf32>
    %306 = arith.negf %305 : vector<2x32xf32>
    %307 = math.exp %306 : vector<2x32xf32>
    %cst_165 = arith.constant 1.000000e+00 : f32
    %308 = vector.broadcast %cst_165 : f32 to vector<2x32xf32>
    %309 = arith.addf %308, %307 : vector<2x32xf32>
    %310 = arith.divf %308, %309 : vector<2x32xf32>
    %311 = vector.extract_strided_slice %294 {offsets = [0, 64], sizes = [2, 32], strides = [1, 1]} : vector<2x96xf32> to vector<2x32xf32>
    %312 = vector.extract_strided_slice %293 {offsets = [0, 64], sizes = [2, 32], strides = [1, 1]} : vector<2x96xf32> to vector<2x32xf32>
    %313 = arith.mulf %302, %312 : vector<2x32xf32>
    %314 = arith.addf %311, %313 : vector<2x32xf32>
    %315 = math.tanh %314 : vector<2x32xf32>
    %cst_166 = arith.constant 1.000000e+00 : f32
    %316 = vector.broadcast %cst_166 : f32 to vector<2x32xf32>
    %317 = arith.subf %316, %310 : vector<2x32xf32>
    %318 = arith.mulf %317, %315 : vector<2x32xf32>
    %319 = arith.mulf %310, %287 : vector<2x32xf32>
    %320 = arith.addf %318, %319 : vector<2x32xf32>
    %c5_167 = arith.constant 5 : index
    %c0_168 = arith.constant 0 : index
    %c0_169 = arith.constant 0 : index
    %321 = vector.load %arg7[%c5_167, %c0_168, %c0_169] : memref<8x2x32xf32, #tpu.memory_space<vmem>>, vector<1x2x32xf32>
    %322 = vector.shape_cast %321 : vector<1x2x32xf32> to vector<2x32xf32>
    %323 = vector.shape_cast %320 : vector<2x32xf32> to vector<1x2x32xf32>
    tpu.vector_store %arg7[%c5_167, %c0_168, %c0_169], %323 {strides = array<i32>} : memref<8x2x32xf32, #tpu.memory_space<vmem>>, vector<1x2x32xf32>,
    %324 = arith.truncf %320 : vector<2x32xf32> to vector<2x32xbf16>
    %cst_170 = arith.constant dense<0.000000e+00> : vector<2x96xf32>
    %325 = tpu.matmul %324, %121, %cst_170 {dimension_numbers = #tpu.dot_dimension_numbers<[1], [0], [0], [1], [0, 0, 1, 1], [], []>} : vector<2x32xbf16>, vector<32x96xbf16>, vector<2x96xf32> -> vector<2x96xf32>
    %326 = arith.addf %325, %124 : vector<2x96xf32>
    %c12 = arith.constant 12 : index
    %c0_171 = arith.constant 0 : index
    %327 = vector.load %arg9[%c12, %c0_171] : memref<16x96xf32, #tpu.memory_space<vmem>>, vector<2x96xf32>
    %328 = vector.extract_strided_slice %327 {offsets = [0, 0], sizes = [2, 32], strides = [1, 1]} : vector<2x96xf32> to vector<2x32xf32>
    %329 = vector.extract_strided_slice %326 {offsets = [0, 0], sizes = [2, 32], strides = [1, 1]} : vector<2x96xf32> to vector<2x32xf32>
    %330 = arith.addf %328, %329 : vector<2x32xf32>
    %331 = arith.negf %330 : vector<2x32xf32>
    %332 = math.exp %331 : vector<2x32xf32>
    %cst_172 = arith.constant 1.000000e+00 : f32
    %333 = vector.broadcast %cst_172 : f32 to vector<2x32xf32>
    %334 = arith.addf %333, %332 : vector<2x32xf32>
    %335 = arith.divf %333, %334 : vector<2x32xf32>
    %336 = vector.extract_strided_slice %327 {offsets = [0, 32], sizes = [2, 32], strides = [1, 1]} : vector<2x96xf32> to vector<2x32xf32>
    %337 = vector.extract_strided_slice %326 {offsets = [0, 32], sizes = [2, 32], strides = [1, 1]} : vector<2x96xf32> to vector<2x32xf32>
    %338 = arith.addf %336, %337 : vector<2x32xf32>
    %339 = arith.negf %338 : vector<2x32xf32>
    %340 = math.exp %339 : vector<2x32xf32>
    %cst_173 = arith.constant 1.000000e+00 : f32
    %341 = vector.broadcast %cst_173 : f32 to vector<2x32xf32>
    %342 = arith.addf %341, %340 : vector<2x32xf32>
    %343 = arith.divf %341, %342 : vector<2x32xf32>
    %344 = vector.extract_strided_slice %327 {offsets = [0, 64], sizes = [2, 32], strides = [1, 1]} : vector<2x96xf32> to vector<2x32xf32>
    %345 = vector.extract_strided_slice %326 {offsets = [0, 64], sizes = [2, 32], strides = [1, 1]} : vector<2x96xf32> to vector<2x32xf32>
    %346 = arith.mulf %335, %345 : vector<2x32xf32>
    %347 = arith.addf %344, %346 : vector<2x32xf32>
    %348 = math.tanh %347 : vector<2x32xf32>
    %cst_174 = arith.constant 1.000000e+00 : f32
    %349 = vector.broadcast %cst_174 : f32 to vector<2x32xf32>
    %350 = arith.subf %349, %343 : vector<2x32xf32>
    %351 = arith.mulf %350, %348 : vector<2x32xf32>
    %352 = arith.mulf %343, %320 : vector<2x32xf32>
    %353 = arith.addf %351, %352 : vector<2x32xf32>
    %c6_175 = arith.constant 6 : index
    %c0_176 = arith.constant 0 : index
    %c0_177 = arith.constant 0 : index
    %354 = vector.load %arg7[%c6_175, %c0_176, %c0_177] : memref<8x2x32xf32, #tpu.memory_space<vmem>>, vector<1x2x32xf32>
    %355 = vector.shape_cast %354 : vector<1x2x32xf32> to vector<2x32xf32>
    %356 = vector.shape_cast %353 : vector<2x32xf32> to vector<1x2x32xf32>
    tpu.vector_store %arg7[%c6_175, %c0_176, %c0_177], %356 {strides = array<i32>} : memref<8x2x32xf32, #tpu.memory_space<vmem>>, vector<1x2x32xf32>,
    %357 = arith.truncf %353 : vector<2x32xf32> to vector<2x32xbf16>
    %cst_178 = arith.constant dense<0.000000e+00> : vector<2x96xf32>
    %358 = tpu.matmul %357, %121, %cst_178 {dimension_numbers = #tpu.dot_dimension_numbers<[1], [0], [0], [1], [0, 0, 1, 1], [], []>} : vector<2x32xbf16>, vector<32x96xbf16>, vector<2x96xf32> -> vector<2x96xf32>
    %359 = arith.addf %358, %124 : vector<2x96xf32>
    %c14 = arith.constant 14 : index
    %c0_179 = arith.constant 0 : index
    %360 = vector.load %arg9[%c14, %c0_179] : memref<16x96xf32, #tpu.memory_space<vmem>>, vector<2x96xf32>
    %361 = vector.extract_strided_slice %360 {offsets = [0, 0], sizes = [2, 32], strides = [1, 1]} : vector<2x96xf32> to vector<2x32xf32>
    %362 = vector.extract_strided_slice %359 {offsets = [0, 0], sizes = [2, 32], strides = [1, 1]} : vector<2x96xf32> to vector<2x32xf32>
    %363 = arith.addf %361, %362 : vector<2x32xf32>
    %364 = arith.negf %363 : vector<2x32xf32>
    %365 = math.exp %364 : vector<2x32xf32>
    %cst_180 = arith.constant 1.000000e+00 : f32
    %366 = vector.broadcast %cst_180 : f32 to vector<2x32xf32>
    %367 = arith.addf %366, %365 : vector<2x32xf32>
    %368 = arith.divf %366, %367 : vector<2x32xf32>
    %369 = vector.extract_strided_slice %360 {offsets = [0, 32], sizes = [2, 32], strides = [1, 1]} : vector<2x96xf32> to vector<2x32xf32>
    %370 = vector.extract_strided_slice %359 {offsets = [0, 32], sizes = [2, 32], strides = [1, 1]} : vector<2x96xf32> to vector<2x32xf32>
    %371 = arith.addf %369, %370 : vector<2x32xf32>
    %372 = arith.negf %371 : vector<2x32xf32>
    %373 = math.exp %372 : vector<2x32xf32>
    %cst_181 = arith.constant 1.000000e+00 : f32
    %374 = vector.broadcast %cst_181 : f32 to vector<2x32xf32>
    %375 = arith.addf %374, %373 : vector<2x32xf32>
    %376 = arith.divf %374, %375 : vector<2x32xf32>
    %377 = vector.extract_strided_slice %360 {offsets = [0, 64], sizes = [2, 32], strides = [1, 1]} : vector<2x96xf32> to vector<2x32xf32>
    %378 = vector.extract_strided_slice %359 {offsets = [0, 64], sizes = [2, 32], strides = [1, 1]} : vector<2x96xf32> to vector<2x32xf32>
    %379 = arith.mulf %368, %378 : vector<2x32xf32>
    %380 = arith.addf %377, %379 : vector<2x32xf32>
    %381 = math.tanh %380 : vector<2x32xf32>
    %cst_182 = arith.constant 1.000000e+00 : f32
    %382 = vector.broadcast %cst_182 : f32 to vector<2x32xf32>
    %383 = arith.subf %382, %376 : vector<2x32xf32>
    %384 = arith.mulf %383, %381 : vector<2x32xf32>
    %385 = arith.mulf %376, %353 : vector<2x32xf32>
    %386 = arith.addf %384, %385 : vector<2x32xf32>
    %c7_183 = arith.constant 7 : index
    %c0_184 = arith.constant 0 : index
    %c0_185 = arith.constant 0 : index
    %387 = vector.load %arg7[%c7_183, %c0_184, %c0_185] : memref<8x2x32xf32, #tpu.memory_space<vmem>>, vector<1x2x32xf32>
    %388 = vector.shape_cast %387 : vector<1x2x32xf32> to vector<2x32xf32>
    %389 = vector.shape_cast %386 : vector<2x32xf32> to vector<1x2x32xf32>
    tpu.vector_store %arg7[%c7_183, %c0_184, %c0_185], %389 {strides = array<i32>} : memref<8x2x32xf32, #tpu.memory_space<vmem>>, vector<1x2x32xf32>,
    return
  }
  func.func @transform_1(%arg0: i32, %arg1: memref<8x2xi32, #tpu.memory_space<smem>>) -> (i32, i32) {
    %c0_i32 = arith.constant 0 : i32
    %c0_i32_0 = arith.constant 0 : i32
    %c0_i32_1 = arith.constant 0 : i32
    return %c0_i32, %c0_i32_0 : i32, i32
  }
  func.func @transform_2(%arg0: i32, %arg1: memref<8x2xi32, #tpu.memory_space<smem>>) -> (i32, i32) {
    %c0_i32 = arith.constant 0 : i32
    %c0_i32_0 = arith.constant 0 : i32
    %c0_i32_1 = arith.constant 0 : i32
    return %c0_i32, %c0_i32_0 : i32, i32
  }
  func.func @transform_3(%arg0: i32, %arg1: memref<8x2xi32, #tpu.memory_space<smem>>) -> (i32, i32) {
    %c0_i32 = arith.constant 0 : i32
    %c0_i32_0 = arith.constant 0 : i32
    %c0_i32_1 = arith.constant 0 : i32
    return %c0_i32, %c0_i32_0 : i32, i32
  }
  func.func @transform_4(%arg0: i32, %arg1: memref<8x2xi32, #tpu.memory_space<smem>>) -> (i32, i32) {
    %c0_i32 = arith.constant 0 : i32
    %c0_i32_0 = arith.constant 0 : i32
    %c0_i32_1 = arith.constant 0 : i32
    return %c0_i32, %c0_i32_0 : i32, i32
  }
  func.func @transform_5(%arg0: i32, %arg1: memref<8x2xi32, #tpu.memory_space<smem>>) -> (i32, i32, i32) {
    %c0_i32 = arith.constant 0 : i32
    %c0_i32_0 = arith.constant 0 : i32
    %c0_i32_1 = arith.constant 0 : i32
    return %c0_i32, %arg0, %c0_i32_0 : i32, i32, i32
  }
}

</mosaic_0001>

<bundles_post_ra>
// kernel: tpu_custom_call.1
= control target key start
LH: loop header
LB: loop body
LE: loop exit
PB: predicated region body
PF: predicated region fallthrough
CT: control target
= control target key end

     0   :  { %s2330_s0 = inlined_call_operand.vmem [shape: s32[8,2], index: 0, kind: input, shape index: {}]   ;;  %s2331_s1 = inlined_call_operand.hbm [shape: f32[16,16], index: 1, kind: input, shape index: {}]   ;;  %s2332_s2 = inlined_call_operand.hbm [shape: bf16[16,96], index: 2, kind: input, shape index: {}]   ;;  %s2333_s3 = inlined_call_operand.vmem [shape: bf16[32,96], index: 3, kind: input, shape index: {}]   ;;  %s2334_s4 = inlined_call_operand.vmem [shape: f32[1,96], index: 4, kind: input, shape index: {}]   ;;  %s2335_s5 = inlined_call_operand.vmem [shape: f32[1,96], index: 5, kind: input, shape index: {}]   ;;  %s2336_s6 = inlined_call_operand.hbm [shape: f32[8,2,32], index: 6, kind: output, shape index: {}]  }
   0x1   :  { %s11_s23 = sshll.u32 %s2330_s0, 4  ;;  %s12_s23 = int_to_ptr.vmem [resolvable:$true] %s11_s23 }
   0x2   :  { %s1373_s24 = scalar_lea.vmem %s12_s23, 128  ;;  %p1378_p1 = scmp.lt.s32.totalorder %s12_s23, %s12_s23 }
   0x3   :  { %p1374_p0 = scmp.ne.s32.totalorder %s12_s23, %s1373_s24  ;;  %p1379_p2 = scmp.lt.s32.totalorder %s1373_s24, %s1373_s24 }
   0x5   :  { %p1380_p3 = por %p1379_p2, %p1378_p1 }
   0x7   :  { %p1381_p4 = pnand %p1380_p3, %p1374_p0 }
   0x9   :  { %1384 = shalt.err (!%p1381_p4)  }
   0xa   :  { %s1821_s25 = smov [#allocation6]  }
   0xb   :  { %14 = dma.vmem_to_smem %s12_s23, 128, %s1821_s25, [#allocation5] }
   0xc   :  { %1813 = dma.done.wait [#allocation5], 128 }
   0xd   :  { %1814 = vsyncadd [#allocation5], 4294967168 }
   0xe   :  { %16 = sfence }
   0xf   :  { %17 = vsyncpa [#allocation8], 0 }
  0x10   :  { %18 = vsyncpa [#allocation9], 0  ;;  %s1822_s26 = smov [#allocation7]   ;;  %s1385_s29 = scalar_lea.hbm %s2332_s2, 128 }
  0x11   :  { %s24_s27 = sshll.u32 %s1822_s26, 4  ;;  %p1386_p5 = scmp.ne.s32.totalorder %s2332_s2, %s1385_s29  ;;  %s25_s27 = int_to_ptr.vmem [resolvable:$true] %s24_s27 }
  0x12   :  { %p1389_p6 = scmp.lt.u32.totalorder %s1385_s29, %s2332_s2 }
  0x14   :  { %p1391_p7 = pnand %p1389_p6, %p1386_p5 }
  0x16   :  { %1394 = shalt.err (!%p1391_p7)
}
  0x17   :  { %s1395_s10 = scalar_lea.vmem %s25_s27, 128  ;;  %p1400_p9 = scmp.lt.s32.totalorder %s25_s27, %s25_s27 }
  0x18   :  { %p1396_p8 = scmp.ne.s32.totalorder %s25_s27, %s1395_s10  ;;  %p1401_p10 = scmp.lt.s32.totalorder %s1395_s10, %s1395_s10 }
  0x1a   :  { %p1402_p11 = por %p1401_p10, %p1400_p9 }
  0x1c   :  { %p1403_p12 = pnand %p1402_p11, %p1396_p8 }
  0x1e   :  { %1406 = shalt.err (!%p1403_p12)
}
  0x1f   :  { %s1823_s11 = smov 64   ;;  %s1824_s12 = smov 4  }
  0x20   :  { %30 = dma.hbm_to_vmem [thread:$0]  %s2332_s2, 128, %s25_s27, [#allocation8], %s1823_s11, %s1823_s11, %s1824_s12  }
  0x21   :  { %1815 = dma.done.wait [#allocation8], 128  }
  0x22   :  { %1816 = vsyncadd [#allocation8], 4294967168  ;;  %s42_s15 = sld [smem:[#allocation6]]  ;;  %s1825_s16 = smov [#allocation2]  }
  0x23   :  { %s52_s17 = sshll.u32 %s1825_s16, 4  ;;  %s1902_s18 = sld [smem:[#allocation6 + $0x1]]  ;;  %s1900_s17 = int_to_ptr.vmem [resolvable:$true] %s52_s17 }
  0x24   :  { %s1826_s19 = smov [#allocation2 + $0x1]   ;;  %s1904_s21 = sld [smem:[#allocation6 + $0x80]] }
  0x25   :  { %s68_s20 = sshll.u32 %s1826_s19, 4  ;;  %s1827_s22 = smov [#allocation2 + $0x2]   ;;  %s1906_s20 = int_to_ptr.vmem [resolvable:$true] %s68_s20 }
  0x26   :  { %s90_s23 = sshll.u32 %s1827_s22, 4  ;;  %s1908_s24 = sld [smem:[#allocation6 + $0x81]]  ;;  %s1910_s23 = int_to_ptr.vmem [resolvable:$true] %s90_s23 }
  0x27   :  { %s1828_s25 = smov [#allocation2 + $0x3]   ;;  %s1921_s9 = scalar_lea.hbm %s2331_s1, 256 }
  0x28   :  { %s1146_s2 = sshll.u32 %s42_s15, 4  ;;  %s1912_s26 = sshll.u32 %s1828_s25, 4  ;;  %s113_s26 = int_to_ptr.vmem [resolvable:$true] %s1912_s26 }
  0x29   :  { %s44_s0 = scalar_lea.hbm %s2331_s1, %s1146_s2  ;;  %s1148_s29 = sshll.u32 %s1902_s18, 4 }
  0x2a   :  { %s1407_s30 = scalar_lea.hbm %s44_s0, 16  ;;  %p1410_p0 = scmp.lt.u32.totalorder %s44_s0, %s2331_s1 }
  0x2b   :  { %p1408_p13 = scmp.ne.s32.totalorder %s44_s0, %s1407_s30  ;;  %p1411_p1 = scmp.lt.u32.totalorder %s1921_s9, %s1407_s30 }
  0x2c   :  { %p1413_p3 = scmp.lt.u32.totalorder %s1407_s30, %s44_s0 }
  0x2d   :  { %p1412_p2 = por %p1411_p1, %p1410_p0 }
  0x2f   :  { %p1414_p4 = por %p1413_p3, %p1412_p2 }
  0x31   :  { %p1415_p5 = pnand %p1414_p4, %p1408_p13 }
  0x33   :  { %1418 = shalt.err (!%p1415_p5)  }
  0x34   :  { %s1419_s13 = scalar_lea.vmem %s1900_s17, 16  ;;  %s1930_s14 = scalar_lea.vmem %s1900_s17, 256 }
  0x35   :  { %p1420_p6 = scmp.ne.s32.totalorder %s1900_s17, %s1419_s13  ;;  %p1424_p7 = scmp.lt.s32.totalorder %s1900_s17, %s1900_s17 }
  0x36   :  { %p1425_p8 = scmp.lt.s32.totalorder %s1930_s14, %s1419_s13 }
  0x38   :  { %p1426_p9 = por %p1425_p8, %p1424_p7 }
  0x3a   :  { %p1427_p10 = pnand %p1426_p9, %p1420_p6 }
  0x3c   :  { %1430 = shalt.err (!%p1427_p10)  }
  0x3d   :  { %55 = dma.hbm_to_vmem [thread:$0]  %s44_s0, 16, %s1900_s17, [#allocation4] }
  0x3e   :  { %s59_s18 = scalar_lea.hbm %s2331_s1, %s1148_s29  ;;  %s1150_s19 = sshll.u32 %s1904_s21, 4 }
  0x3f   :  { %s1431_s22 = scalar_lea.hbm %s59_s18, 16  ;;  %p1434_p12 = scmp.lt.u32.totalorder %s59_s18, %s2331_s1 }
  0x40   :  { %p1432_p11 = scmp.ne.s32.totalorder %s59_s18, %s1431_s22  ;;  %p1435_p13 = scmp.lt.u32.totalorder %s1921_s9, %s1431_s22 }
  0x41   :  { %p1437_p1 = scmp.lt.u32.totalorder %s1431_s22, %s59_s18 }
  0x42   :  { %p1436_p0 = por %p1435_p13, %p1434_p12 }
  0x44   :  { %p1438_p2 = por %p1437_p1, %p1436_p0 }
  0x46   :  { %p1439_p3 = pnand %p1438_p2, %p1432_p11 }
  0x48   :  { %1442 = shalt.err (!%p1439_p3)  }
  0x49   :  { %s1443_s27 = scalar_lea.vmem %s1906_s20, 16  ;;  %p1448_p5 = scmp.lt.s32.totalorder %s1906_s20, %s1900_s17 }
  0x4a   :  { %p1444_p4 = scmp.ne.s32.totalorder %s1906_s20, %s1443_s27  ;;  %p1449_p6 = scmp.lt.s32.totalorder %s1930_s14, %s1443_s27 }
  0x4c   :  { %p1450_p7 = por %p1449_p6, %p1448_p5 }
  0x4e   :  { %p1451_p8 = pnand %p1450_p7, %p1444_p4 }
  0x50   :  { %1454 = shalt.err (!%p1451_p8)  }
  0x51   :  { %71 = dma.hbm_to_vmem [thread:$0]  %s59_s18, 16, %s1906_s20, [#allocation4] }
  0x52   :  { %s81_s0 = scalar_lea.hbm %s2331_s1, %s1150_s19  ;;  %s1152_s29 = sshll.u32 %s1908_s24, 4 }
  0x53   :  { %s1455_s30 = scalar_lea.hbm %s81_s0, 16  ;;  %p1458_p10 = scmp.lt.u32.totalorder %s81_s0, %s2331_s1 }
  0x54   :  { %p1456_p9 = scmp.ne.s32.totalorder %s81_s0, %s1455_s30  ;;  %p1459_p11 = scmp.lt.u32.totalorder %s1921_s9, %s1455_s30 }
  0x55   :  { %p1461_p13 = scmp.lt.u32.totalorder %s1455_s30, %s81_s0 }
  0x56   :  { %p1460_p12 = por %p1459_p11, %p1458_p10 }
  0x58   :  { %p1462_p0 = por %p1461_p13, %p1460_p12 }
  0x5a   :  { %p1463_p1 = pnand %p1462_p0, %p1456_p9 }
  0x5c   :  { %1466 = shalt.err (!%p1463_p1)  }
  0x5d   :  { %s1467_s20 = scalar_lea.vmem %s1910_s23, 16  ;;  %p1472_p3 = scmp.lt.s32.totalorder %s1910_s23, %s1900_s17 }
  0x5e   :  { %p1468_p2 = scmp.ne.s32.totalorder %s1910_s23, %s1467_s20  ;;  %p1473_p4 = scmp.lt.s32.totalorder %s1930_s14, %s1467_s20 }
  0x60   :  { %p1474_p5 = por %p1473_p4, %p1472_p3 }
  0x62   :  { %p1475_p6 = pnand %p1474_p5, %p1468_p2 }
  0x64   :  { %1478 = shalt.err (!%p1475_p6)  }
  0x65   :  { %93 = dma.hbm_to_vmem [thread:$0]  %s81_s0, 16, %s1910_s23, [#allocation4] }
  0x66   :  { %s103_s12 = scalar_lea.hbm %s2331_s1, %s1152_s29 }
  0x67   :  { %s1479_s13 = scalar_lea.hbm %s103_s12, 16  ;;  %p1482_p8 = scmp.lt.u32.totalorder %s103_s12, %s2331_s1 }
  0x68   :  { %p1480_p7 = scmp.ne.s32.totalorder %s103_s12, %s1479_s13  ;;  %p1483_p9 = scmp.lt.u32.totalorder %s1921_s9, %s1479_s13 }
  0x69   :  { %p1485_p11 = scmp.lt.u32.totalorder %s1479_s13, %s103_s12 }
  0x6a   :  { %p1484_p10 = por %p1483_p9, %p1482_p8 }
  0x6c   :  { %p1486_p12 = por %p1485_p11, %p1484_p10 }
  0x6e   :  { %p1487_p13 = pnand %p1486_p12, %p1480_p7 }
  0x70   :  { %1490 = shalt.err (!%p1487_p13)  }
  0x71   :  { %s1491_s18 = scalar_lea.vmem %s113_s26, 16  ;;  %p1496_p1 = scmp.lt.s32.totalorder %s113_s26, %s1900_s17 }
  0x72   :  { %p1492_p0 = scmp.ne.s32.totalorder %s113_s26, %s1491_s18  ;;  %p1497_p2 = scmp.lt.s32.totalorder %s1930_s14, %s1491_s18 }
  0x74   :  { %p1498_p3 = por %p1497_p2, %p1496_p1 }
  0x76   :  { %p1499_p4 = pnand %p1498_p3, %p1492_p0 }
  0x78   :  { %1502 = shalt.err (!%p1499_p4)  }
  0x79   :  { %115 = dma.hbm_to_vmem [thread:$0]  %s103_s12, 16, %s113_s26, [#allocation4] }
  0x7a   :  { %s1153_s23 = sld [smem:[#allocation6 + $0x100]]  ;;  %s1829_s19 = smov [#allocation2 + $0x4]  }
  0x7b   :  { %s130_s22 = sshll.u32 %s1829_s19, 4  ;;  %s1974_s2 = sld [smem:[#allocation6 + $0x101]]  ;;  %s131_s22 = int_to_ptr.vmem [resolvable:$true] %s130_s22 }
  0x7c   :  { %s1830_s25 = smov [#allocation2 + $0x5]   ;;  %s1976_s21 = sld [smem:[#allocation6 + $0x180]] }
  0x7d   :  { %s148_s27 = sshll.u32 %s1830_s25, 4  ;;  %s1831_s28 = smov [#allocation2 + $0x6]   ;;  %s1978_s27 = int_to_ptr.vmem [resolvable:$true] %s148_s27 }
  0x7e   :  { %s166_s0 = sshll.u32 %s1831_s28, 4  ;;  %s1980_s29 = sld [smem:[#allocation6 + $0x181]]  ;;  %s1982_s0 = int_to_ptr.vmem [resolvable:$true] %s166_s0 }
  0x80   :  { %s1154_s30 = sshll.u32 %s1153_s23, 4 }
  0x81   :  { %s121_s8 = scalar_lea.hbm %s2331_s1, %s1154_s30  ;;  %s1156_s20 = sshll.u32 %s1974_s2, 4 }
  0x82   :  { %s1503_s24 = scalar_lea.hbm %s121_s8, 16  ;;  %p1506_p6 = scmp.lt.u32.totalorder %s121_s8, %s2331_s1 }
  0x83   :  { %p1504_p5 = scmp.ne.s32.totalorder %s121_s8, %s1503_s24  ;;  %p1507_p7 = scmp.lt.u32.totalorder %s1921_s9, %s1503_s24 }
  0x84   :  { %p1509_p9 = scmp.lt.u32.totalorder %s1503_s24, %s121_s8 }
  0x85   :  { %p1508_p8 = por %p1507_p7, %p1506_p6 }
  0x87   :  { %p1510_p10 = por %p1509_p9, %p1508_p8 }
  0x89   :  { %p1511_p11 = pnand %p1510_p10, %p1504_p5 }
  0x8b   :  { %1514 = shalt.err (!%p1511_p11)  }
  0x8c   :  { %s1515_s13 = scalar_lea.vmem %s131_s22, 16  ;;  %p1520_p13 = scmp.lt.s32.totalorder %s131_s22, %s1900_s17 }
  0x8d   :  { %p1516_p12 = scmp.ne.s32.totalorder %s131_s22, %s1515_s13  ;;  %p1521_p0 = scmp.lt.s32.totalorder %s1930_s14, %s1515_s13 }
  0x8f   :  { %p1522_p1 = por %p1521_p0, %p1520_p13 }
  0x91   :  { %p1523_p2 = pnand %p1522_p1, %p1516_p12 }
  0x93   :  { %1526 = shalt.err (!%p1523_p2)  }
  0x94   :  { %133 = dma.hbm_to_vmem [thread:$0]  %s121_s8, 16, %s131_s22, [#allocation4] }
  0x95   :  { %s139_s18 = scalar_lea.hbm %s2331_s1, %s1156_s20  ;;  %s1158_s23 = sshll.u32 %s1976_s21, 4 }
  0x96   :  { %s1527_s19 = scalar_lea.hbm %s139_s18, 16  ;;  %p1530_p4 = scmp.lt.u32.totalorder %s139_s18, %s2331_s1 }
  0x97   :  { %p1528_p3 = scmp.ne.s32.totalorder %s139_s18, %s1527_s19  ;;  %p1531_p5 = scmp.lt.u32.totalorder %s1921_s9, %s1527_s19 }
  0x98   :  { %p1533_p7 = scmp.lt.u32.totalorder %s1527_s19, %s139_s18 }
  0x99   :  { %p1532_p6 = por %p1531_p5, %p1530_p4 }
  0x9b   :  { %p1534_p8 = por %p1533_p7, %p1532_p6 }
  0x9d   :  { %p1535_p9 = pnand %p1534_p8, %p1528_p3 }
  0x9f   :  { %1538 = shalt.err (!%p1535_p9)  }
  0xa0   :  { %s1539_s22 = scalar_lea.vmem %s1978_s27, 16  ;;  %p1544_p11 = scmp.lt.s32.totalorder %s1978_s27, %s1900_s17 }
  0xa1   :  { %p1540_p10 = scmp.ne.s32.totalorder %s1978_s27, %s1539_s22  ;;  %p1545_p12 = scmp.lt.s32.totalorder %s1930_s14, %s1539_s22 }
  0xa3   :  { %p1546_p13 = por %p1545_p12, %p1544_p11 }
  0xa5   :  { %p1547_p0 = pnand %p1546_p13, %p1540_p10 }
  0xa7   :  { %1550 = shalt.err (!%p1547_p0)  }
  0xa8   :  { %151 = dma.hbm_to_vmem [thread:$0]  %s139_s18, 16, %s1978_s27, [#allocation4] }
  0xa9   :  { %s157_s30 = scalar_lea.hbm %s2331_s1, %s1158_s23  ;;  %s1160_s26 = sshll.u32 %s1980_s29, 4 }
  0xaa   :  { %s1551_s7 = scalar_lea.hbm %s157_s30, 16  ;;  %p1554_p2 = scmp.lt.u32.totalorder %s157_s30, %s2331_s1 }
  0xab   :  { %p1552_p1 = scmp.ne.s32.totalorder %s157_s30, %s1551_s7  ;;  %p1555_p3 = scmp.lt.u32.totalorder %s1921_s9, %s1551_s7 }
  0xac   :  { %p1557_p5 = scmp.lt.u32.totalorder %s1551_s7, %s157_s30 }
  0xad   :  { %p1556_p4 = por %p1555_p3, %p1554_p2 }
  0xaf   :  { %p1558_p6 = por %p1557_p5, %p1556_p4 }
  0xb1   :  { %p1559_p7 = pnand %p1558_p6, %p1552_p1 }
  0xb3   :  { %1562 = shalt.err (!%p1559_p7)  }
  0xb4   :  { %s1563_s27 = scalar_lea.vmem %s1982_s0, 16  ;;  %p1568_p9 = scmp.lt.s32.totalorder %s1982_s0, %s1900_s17 }
  0xb5   :  { %p1564_p8 = scmp.ne.s32.totalorder %s1982_s0, %s1563_s27  ;;  %p1569_p10 = scmp.lt.s32.totalorder %s1930_s14, %s1563_s27 }
  0xb7   :  { %p1570_p11 = por %p1569_p10, %p1568_p9 }
  0xb9   :  { %p1571_p12 = pnand %p1570_p11, %p1564_p8 }
  0xbb   :  { %1574 = shalt.err (!%p1571_p12)  }
  0xbc   :  { %169 = dma.hbm_to_vmem [thread:$0]  %s157_s30, 16, %s1982_s0, [#allocation4] }
  0xbd   :  { %s175_s10 = scalar_lea.hbm %s2331_s1, %s1160_s26  ;;  %s1832_s12 = smov [#allocation2 + $0x7]  }
  0xbe   :  { %s184_s13 = sshll.u32 %s1832_s12, 4  ;;  %s2025_s15 = sld [smem:[#allocation6 + $0x200]]  ;;  %s185_s13 = int_to_ptr.vmem [resolvable:$true] %s184_s13 }
  0xbf   :  { %s1575_s16 = scalar_lea.hbm %s175_s10, 16  ;;  %p1578_p0 = scmp.lt.u32.totalorder %s175_s10, %s2331_s1 }
  0xc0   :  { %p1576_p13 = scmp.ne.s32.totalorder %s175_s10, %s1575_s16  ;;  %p1579_p1 = scmp.lt.u32.totalorder %s1921_s9, %s1575_s16 }
  0xc1   :  { %p1581_p3 = scmp.lt.u32.totalorder %s1575_s16, %s175_s10 }
  0xc2   :  { %p1580_p2 = por %p1579_p1, %p1578_p0 }
  0xc4   :  { %p1582_p4 = por %p1581_p3, %p1580_p2 }
  0xc6   :  { %p1583_p5 = pnand %p1582_p4, %p1576_p13 }
  0xc8   :  { %1586 = shalt.err (!%p1583_p5)  }
  0xc9   :  { %s1587_s0 = scalar_lea.vmem %s185_s13, 16  ;;  %p1592_p7 = scmp.lt.s32.totalorder %s185_s13, %s1900_s17 }
  0xca   :  { %p1588_p6 = scmp.ne.s32.totalorder %s185_s13, %s1587_s0  ;;  %p1593_p8 = scmp.lt.s32.totalorder %s1930_s14, %s1587_s0 }
  0xcc   :  { %p1594_p9 = por %p1593_p8, %p1592_p7 }
  0xce   :  { %p1595_p10 = pnand %p1594_p9, %p1588_p6 }
  0xd0   :  { %1598 = shalt.err (!%p1595_p10)  }
  0xd1   :  { %187 = dma.hbm_to_vmem [thread:$0]  %s175_s10, 16, %s185_s13, [#allocation4] }
  0xd2   :  { %s1833_s19 = smov [#allocation2 + $0x8]   ;;  %s2033_s25 = sld [smem:[#allocation6 + $0x201]] }
  0xd3   :  { %s202_s2 = sshll.u32 %s1833_s19, 4  ;;  %s1834_s22 = smov [#allocation2 + $0x9]   ;;  %s203_s2 = int_to_ptr.vmem [resolvable:$true] %s202_s2 }
  0xd4   :  { %s220_s21 = sshll.u32 %s1834_s22, 4  ;;  %s2035_s28 = sld [smem:[#allocation6 + $0x280]]  ;;  %s2038_s21 = int_to_ptr.vmem [resolvable:$true] %s220_s21 }
  0xd5   :  { %s1162_s30 = sshll.u32 %s2025_s15, 4 }
  0xd6   :  { %s193_s8 = scalar_lea.hbm %s2331_s1, %s1162_s30 }
  0xd7   :  { %s1599_s20 = scalar_lea.hbm %s193_s8, 16  ;;  %p1602_p12 = scmp.lt.u32.totalorder %s193_s8, %s2331_s1 }
  0xd8   :  { %p1600_p11 = scmp.ne.s32.totalorder %s193_s8, %s1599_s20  ;;  %p1603_p13 = scmp.lt.u32.totalorder %s1921_s9, %s1599_s20 }
  0xd9   :  { %p1605_p1 = scmp.lt.u32.totalorder %s1599_s20, %s193_s8 }
  0xda   :  { %p1604_p0 = por %p1603_p13, %p1602_p12 }
  0xdc   :  { %p1606_p2 = por %p1605_p1, %p1604_p0 }
  0xde   :  { %p1607_p3 = pnand %p1606_p2, %p1600_p11 }
  0xe0   :  { %1610 = shalt.err (!%p1607_p3)  }
  0xe1   :  { %s1611_s24 = scalar_lea.vmem %s203_s2, 16  ;;  %p1616_p5 = scmp.lt.s32.totalorder %s203_s2, %s1900_s17 }
  0xe2   :  { %p1612_p4 = scmp.ne.s32.totalorder %s203_s2, %s1611_s24  ;;  %p1617_p6 = scmp.lt.s32.totalorder %s1930_s14, %s1611_s24 }
  0xe4   :  { %p1618_p7 = por %p1617_p6, %p1616_p5 }
  0xe6   :  { %p1619_p8 = pnand %p1618_p7, %p1612_p4 }
  0xe8   :  { %1622 = shalt.err (!%p1619_p8)  }
  0xe9   :  { %205 = dma.hbm_to_vmem [thread:$0]  %s193_s8, 16, %s203_s2, [#allocation4] }
  0xea   :  { %s1164_s10 = sshll.u32 %s2033_s25, 4  ;;  %s1835_s12 = smov [#allocation2 + $0xa]  }
  0xeb   :  { %s238_s13 = sshll.u32 %s1835_s12, 4  ;;  %s211_s18 = scalar_lea.hbm %s2331_s1, %s1164_s10  ;;  %s2053_s13 = int_to_ptr.vmem [resolvable:$true] %s238_s13 }
  0xec   :  { %s1623_s23 = scalar_lea.hbm %s211_s18, 16  ;;  %p1626_p10 = scmp.lt.u32.totalorder %s211_s18, %s2331_s1 }
  0xed   :  { %p1624_p9 = scmp.ne.s32.totalorder %s211_s18, %s1623_s23  ;;  %p1627_p11 = scmp.lt.u32.totalorder %s1921_s9, %s1623_s23 }
  0xee   :  { %p1629_p13 = scmp.lt.u32.totalorder %s1623_s23, %s211_s18 }
  0xef   :  { %p1628_p12 = por %p1627_p11, %p1626_p10 }
  0xf1   :  { %p1630_p0 = por %p1629_p13, %p1628_p12 }
  0xf3   :  { %p1631_p1 = pnand %p1630_p0, %p1624_p9 }
  0xf5   :  { %1634 = shalt.err (!%p1631_p1)  }
  0xf6   :  { %s1635_s2 = scalar_lea.vmem %s2038_s21, 16  ;;  %p1640_p3 = scmp.lt.s32.totalorder %s2038_s21, %s1900_s17 }
  0xf7   :  { %p1636_p2 = scmp.ne.s32.totalorder %s2038_s21, %s1635_s2  ;;  %p1641_p4 = scmp.lt.s32.totalorder %s1930_s14, %s1635_s2 }
  0xf9   :  { %p1642_p5 = por %p1641_p4, %p1640_p3 }
  0xfb   :  { %p1643_p6 = pnand %p1642_p5, %p1636_p2 }
  0xfd   :  { %1646 = shalt.err (!%p1643_p6)  }
  0xfe   :  { %223 = dma.hbm_to_vmem [thread:$0]  %s211_s18, 16, %s2038_s21, [#allocation4] }
  0xff   :  { %s1166_s25 = sshll.u32 %s2035_s28, 4  ;;  %s2066_s22 = sld [smem:[#allocation6 + $0x281]] }
 0x100   :  { %s229_s7 = scalar_lea.hbm %s2331_s1, %s1166_s25 }
 0x101   :  { %s1647_s8 = scalar_lea.hbm %s229_s7, 16  ;;  %p1650_p8 = scmp.lt.u32.totalorder %s229_s7, %s2331_s1 }
 0x102   :  { %p1648_p7 = scmp.ne.s32.totalorder %s229_s7, %s1647_s8  ;;  %p1651_p9 = scmp.lt.u32.totalorder %s1921_s9, %s1647_s8 }
 0x103   :  { %p1653_p11 = scmp.lt.u32.totalorder %s1647_s8, %s229_s7 }
 0x104   :  { %p1652_p10 = por %p1651_p9, %p1650_p8 }
 0x106   :  { %p1654_p12 = por %p1653_p11, %p1652_p10 }
 0x108   :  { %p1655_p13 = pnand %p1654_p12, %p1648_p7 }
 0x10a   :  { %1658 = shalt.err (!%p1655_p13)  }
 0x10b   :  { %s1659_s21 = scalar_lea.vmem %s2053_s13, 16  ;;  %p1664_p1 = scmp.lt.s32.totalorder %s2053_s13, %s1900_s17 }
 0x10c   :  { %p1660_p0 = scmp.ne.s32.totalorder %s2053_s13, %s1659_s21  ;;  %p1665_p2 = scmp.lt.s32.totalorder %s1930_s14, %s1659_s21 }
 0x10e   :  { %p1666_p3 = por %p1665_p2, %p1664_p1 }
 0x110   :  { %p1667_p4 = pnand %p1666_p3, %p1660_p0 }
 0x112   :  { %1670 = shalt.err (!%p1667_p4)  }
 0x113   :  { %241 = dma.hbm_to_vmem [thread:$0]  %s229_s7, 16, %s2053_s13, [#allocation4] }
 0x114   :  { %s1836_s28 = smov [#allocation2 + $0xb]   ;;  %s2081_s24 = sld [smem:[#allocation6 + $0x300]] }
 0x115   :  { %s256_s29 = sshll.u32 %s1836_s28, 4  ;;  %s1837_s10 = smov [#allocation2 + $0xc]   ;;  %s257_s29 = int_to_ptr.vmem [resolvable:$true] %s256_s29 }
 0x116   :  { %s274_s12 = sshll.u32 %s1837_s10, 4  ;;  %s2083_s15 = sld [smem:[#allocation6 + $0x301]]  ;;  %s2086_s12 = int_to_ptr.vmem [resolvable:$true] %s274_s12 }
 0x117   :  { %s1168_s16 = sshll.u32 %s2066_s22, 4 }
 0x118   :  { %s247_s0 = scalar_lea.hbm %s2331_s1, %s1168_s16 }
 0x119   :  { %s1671_s19 = scalar_lea.hbm %s247_s0, 16  ;;  %p1674_p6 = scmp.lt.u32.totalorder %s247_s0, %s2331_s1 }
 0x11a   :  { %p1672_p5 = scmp.ne.s32.totalorder %s247_s0, %s1671_s19  ;;  %p1675_p7 = scmp.lt.u32.totalorder %s1921_s9, %s1671_s19 }
 0x11b   :  { %p1677_p9 = scmp.lt.u32.totalorder %s1671_s19, %s247_s0 }
 0x11c   :  { %p1676_p8 = por %p1675_p7, %p1674_p6 }
 0x11e   :  { %p1678_p10 = por %p1677_p9, %p1676_p8 }
 0x120   :  { %p1679_p11 = pnand %p1678_p10, %p1672_p5 }
 0x122   :  { %1682 = shalt.err (!%p1679_p11)  }
 0x123   :  { %s1683_s25 = scalar_lea.vmem %s257_s29, 16  ;;  %p1688_p13 = scmp.lt.s32.totalorder %s257_s29, %s1900_s17 }
 0x124   :  { %p1684_p12 = scmp.ne.s32.totalorder %s257_s29, %s1683_s25  ;;  %p1689_p0 = scmp.lt.s32.totalorder %s1930_s14, %s1683_s25 }
 0x126   :  { %p1690_p1 = por %p1689_p0, %p1688_p13 }
 0x128   :  { %p1691_p2 = pnand %p1690_p1, %p1684_p12 }
 0x12a   :  { %1694 = shalt.err (!%p1691_p2)  }
 0x12b   :  { %259 = dma.hbm_to_vmem [thread:$0]  %s247_s0, 16, %s257_s29, [#allocation4] }
 0x12c   :  { %s1170_s22 = sshll.u32 %s2081_s24, 4  ;;  %s1838_s30 = smov [#allocation2 + $0xd]  }
 0x12d   :  { %s292_s26 = sshll.u32 %s1838_s30, 4  ;;  %s265_s20 = scalar_lea.hbm %s2331_s1, %s1170_s22  ;;  %s2101_s26 = int_to_ptr.vmem [resolvable:$true] %s292_s26 }
 0x12e   :  { %s1695_s27 = scalar_lea.hbm %s265_s20, 16  ;;  %p1698_p4 = scmp.lt.u32.totalorder %s265_s20, %s2331_s1 }
 0x12f   :  { %p1696_p3 = scmp.ne.s32.totalorder %s265_s20, %s1695_s27  ;;  %p1699_p5 = scmp.lt.u32.totalorder %s1921_s9, %s1695_s27 }
 0x130   :  { %p1701_p7 = scmp.lt.u32.totalorder %s1695_s27, %s265_s20 }
 0x131   :  { %p1700_p6 = por %p1699_p5, %p1698_p4 }
 0x133   :  { %p1702_p8 = por %p1701_p7, %p1700_p6 }
 0x135   :  { %p1703_p9 = pnand %p1702_p8, %p1696_p3 }
 0x137   :  { %1706 = shalt.err (!%p1703_p9)  }
 0x138   :  { %s1707_s29 = scalar_lea.vmem %s2086_s12, 16  ;;  %p1712_p11 = scmp.lt.s32.totalorder %s2086_s12, %s1900_s17 }
 0x139   :  { %p1708_p10 = scmp.ne.s32.totalorder %s2086_s12, %s1707_s29  ;;  %p1713_p12 = scmp.lt.s32.totalorder %s1930_s14, %s1707_s29 }
 0x13b   :  { %p1714_p13 = por %p1713_p12, %p1712_p11 }
 0x13d   :  { %p1715_p0 = pnand %p1714_p13, %p1708_p10 }
 0x13f   :  { %1718 = shalt.err (!%p1715_p0)  }
 0x140   :  { %277 = dma.hbm_to_vmem [thread:$0]  %s265_s20, 16, %s2086_s12, [#allocation4] }
 0x141   :  { %s1172_s24 = sshll.u32 %s2083_s15, 4  ;;  %s1173_s10 = sld [smem:[#allocation6 + $0x380]] }
 0x142   :  { %s283_s23 = scalar_lea.hbm %s2331_s1, %s1172_s24 }
 0x143   :  { %s1719_s0 = scalar_lea.hbm %s283_s23, 16  ;;  %p1722_p2 = scmp.lt.u32.totalorder %s283_s23, %s2331_s1 }
 0x144   :  { %p1720_p1 = scmp.ne.s32.totalorder %s283_s23, %s1719_s0  ;;  %p1723_p3 = scmp.lt.u32.totalorder %s1921_s9, %s1719_s0 }
 0x145   :  { %p1725_p5 = scmp.lt.u32.totalorder %s1719_s0, %s283_s23 }
 0x146   :  { %p1724_p4 = por %p1723_p3, %p1722_p2 }
 0x148   :  { %p1726_p6 = por %p1725_p5, %p1724_p4 }
 0x14a   :  { %p1727_p7 = pnand %p1726_p6, %p1720_p1 }
 0x14c   :  { %1730 = shalt.err (!%p1727_p7)  }
 0x14d   :  { %s1731_s12 = scalar_lea.vmem %s2101_s26, 16  ;;  %p1736_p9 = scmp.lt.s32.totalorder %s2101_s26, %s1900_s17 }
 0x14e   :  { %p1732_p8 = scmp.ne.s32.totalorder %s2101_s26, %s1731_s12  ;;  %p1737_p10 = scmp.lt.s32.totalorder %s1930_s14, %s1731_s12 }
 0x150   :  { %p1738_p11 = por %p1737_p10, %p1736_p9 }
 0x152   :  { %p1739_p12 = pnand %p1738_p11, %p1732_p8 }
 0x154   :  { %1742 = shalt.err (!%p1739_p12)  }
 0x155   :  { %295 = dma.hbm_to_vmem [thread:$0]  %s283_s23, 16, %s2101_s26, [#allocation4] }
 0x156   :  { %s1839_s15 = smov [#allocation2 + $0xe]   ;;  %s1175_s25 = sld [smem:[#allocation6 + $0x381]] }
 0x157   :  { %s310_s13 = sshll.u32 %s1839_s15, 4  ;;  %s1840_s22 = smov [#allocation2 + $0xf]   ;;  %s311_s13 = int_to_ptr.vmem [resolvable:$true] %s310_s13 }
 0x158   :  { %s328_s30 = sshll.u32 %s1840_s22, 4  ;;  %s1174_s7 = sshll.u32 %s1173_s10, 4  ;;  %s2130_s30 = int_to_ptr.vmem [resolvable:$true] %s328_s30 }
 0x159   :  { %s301_s27 = scalar_lea.hbm %s2331_s1, %s1174_s7 }
 0x15a   :  { %s1743_s21 = scalar_lea.hbm %s301_s27, 16  ;;  %p1746_p0 = scmp.lt.u32.totalorder %s301_s27, %s2331_s1 }
 0x15b   :  { %p1744_p13 = scmp.ne.s32.totalorder %s301_s27, %s1743_s21  ;;  %p1747_p1 = scmp.lt.u32.totalorder %s1921_s9, %s1743_s21 }
 0x15c   :  { %p1749_p3 = scmp.lt.u32.totalorder %s1743_s21, %s301_s27 }
 0x15d   :  { %p1748_p2 = por %p1747_p1, %p1746_p0 }
 0x15f   :  { %p1750_p4 = por %p1749_p3, %p1748_p2 }
 0x161   :  { %p1751_p5 = pnand %p1750_p4, %p1744_p13 }
 0x163   :  { %1754 = shalt.err (!%p1751_p5)  }
 0x164   :  { %s1755_s26 = scalar_lea.vmem %s311_s13, 16  ;;  %p1760_p7 = scmp.lt.s32.totalorder %s311_s13, %s1900_s17 }
 0x165   :  { %p1756_p6 = scmp.ne.s32.totalorder %s311_s13, %s1755_s26  ;;  %p1761_p8 = scmp.lt.s32.totalorder %s1930_s14, %s1755_s26 }
 0x167   :  { %p1762_p9 = por %p1761_p8, %p1760_p7 }
 0x169   :  { %p1763_p10 = pnand %p1762_p9, %p1756_p6 }
 0x16b   :  { %1766 = shalt.err (!%p1763_p10)  }
 0x16c   :  { %313 = dma.hbm_to_vmem [thread:$0]  %s301_s27, 16, %s311_s13, [#allocation4] }
 0x16d   :  { %s1176_s24 = sshll.u32 %s1175_s25, 4 }
 0x16e   :  { %s319_s18 = scalar_lea.hbm %s2331_s1, %s1176_s24 }
 0x16f   :  { %s1767_s23 = scalar_lea.hbm %s319_s18, 16  ;;  %p1770_p12 = scmp.lt.u32.totalorder %s319_s18, %s2331_s1 }
 0x170   :  { %p1768_p11 = scmp.ne.s32.totalorder %s319_s18, %s1767_s23  ;;  %p1771_p13 = scmp.lt.u32.totalorder %s1921_s9, %s1767_s23 }
 0x171   :  { %p1773_p1 = scmp.lt.u32.totalorder %s1767_s23, %s319_s18 }
 0x172   :  { %p1772_p0 = por %p1771_p13, %p1770_p12 }
 0x174   :  { %p1774_p2 = por %p1773_p1, %p1772_p0 }
 0x176   :  { %p1775_p3 = pnand %p1774_p2, %p1768_p11 }
 0x178   :  { %1778 = shalt.err (!%p1775_p3)  }
 0x179   :  { %s1779_s2 = scalar_lea.vmem %s2130_s30, 16  ;;  %p1784_p5 = scmp.lt.s32.totalorder %s2130_s30, %s1900_s17 }
 0x17a   :  { %p1780_p4 = scmp.ne.s32.totalorder %s2130_s30, %s1779_s2  ;;  %p1785_p6 = scmp.lt.s32.totalorder %s1930_s14, %s1779_s2 }
 0x17c   :  { %p1786_p7 = por %p1785_p6, %p1784_p5 }
 0x17e   :  { %p1787_p8 = pnand %p1786_p7, %p1780_p4 }
 0x180   :  { %1790 = shalt.err (!%p1787_p8)  }
 0x181   :  { %331 = dma.hbm_to_vmem [thread:$0]  %s319_s18, 16, %s2130_s30, [#allocation4] }
 0x182   :  { %1817 = dma.done.wait [#allocation4], 256 }
 0x183   :  { %1818 = vsyncadd [#allocation4], 4294967040  ;;  %v1841_v0 = vmov 0.0   ;;  %vm1842_vm0 = vmmov 0   ;;  %v1322_v1 = vld [vmem:[#allocation7] sm:$0xff]   ;;  %v2160_v2 = vld [vmem:[%s2333_s3] sm:$0xff]  }
 0x184   :  { %1225 = vmatprep.subr.bf16.mxu0 %v1841_v0  ;;  %1231 = vmatprep.subr.bf16.mxu1 %v1841_v0  ;;  %v365_v3 = vld [vmem:[#allocation2] sm:$0xff]  ;;  %v366_v4 = vld [vmem:[#allocation2 + $0x8] sm:$0xff]  ;;  %vm383_vm1 = vcmask 130048   ;;  %v2166_v6 = vld [vmem:[%s2333_s3 + $0x8] sm:$0xff]   ;;  %v1843_v7 = vmov 0   ;;  %vm428_vm2 = vcmask 785408  }
 0x185   :  { %1227 = vmatprep.mubr.msk.bf16.mxu0 %vm1842_vm0, %v1841_v0  ;;  %1235 = vmatprep.mubr.msk.bf16.mxu1 %vm1842_vm0, %v1841_v0  ;;  %v367_v5 = vpack.c.bf16 %v366_v4, %v365_v3  ;;  %v1177_v8 = vld [vmem:[%s2334_s4] ss:$0 sm:$0xff]  ;;  %s1844_s4 = smov 96   ;;  %vm454_vm3 = vcmask 261120   ;;  %vm529_vm4 = vcmask 254976  }
 0x186   :  { %1226 = vmatpush3.bf16.msra.mxu0 %v1322_v1  ;;  %1232 = vmatpush3.bf16.msra.mxu1 %v2160_v2  ;;  %v2190_v13 = vld [vmem:[%s2335_s5] ss:$0 sm:$0xff]  ;;  %s1845_s5 = smov [#allocation10]  }
 0x187   :  { %1239 = vmatprep.subr.bf16.mxu0 %v1841_v0  ;;  %1233 = vmatprep.subr.bf16.mxu1 %v1841_v0 }
 0x189   :  { %1228 = vmatmul.mubr.msk.bf16.vlgmr.msra.gmra.mrb[0].mxu0 %vm383_vm1, %v367_v5 }
 0x18a   :  { %1240 = vmatpush3.bf16.msra.mxu0 %v2160_v2  ;;  %1243 = vmatprep.mubr.msk.bf16.mxu0 %vm1842_vm0, %v1841_v0 }
 0x18b   :  { %1234 = vmatpush3.bf16.msra.mxu1 %v2166_v6  ;;  %1241 = vmatprep.subr.bf16.mxu0 %v1841_v0 }
 0x18c   :  { %1247 = vmatprep.subr.bf16.mxu1 %v1841_v0 }
 0x18e   :  { %1236 = vmatmul.mubr.bf16.vlgmr.msra.gmra.mrb[0].mxu1 %v1843_v7  ;;  %1242 = vmatpush3.bf16.msra.mxu0 %v2166_v6 }
 0x18f   :  { %1248 = vmatpush3.bf16.msra.mxu1 %v2160_v2  ;;  %1251 = vmatprep.mubr.msk.bf16.mxu1 %vm1842_vm0, %v1841_v0 }
 0x190   :  { %1249 = vmatprep.subr.bf16.mxu1 %v1841_v0  ;;  %1255 = vmatprep.subr.bf16.mxu0 %v1841_v0 }
 0x193   :  { %1250 = vmatpush3.bf16.msra.mxu1 %v2166_v6 }
 0x194   :  { %1263 = vmatprep.subr.bf16.mxu1 %v1841_v0 }
 0x25c   :  { %v421_v9 = vpop.f32.mrb[0].mxu0 }
 0x25d   :  { %v422_v10 = vadd.f32 %v1177_v8, %v421_v9  ;;  %v1229_v11 = vpop.f32.mrb[1].mxu0 }
 0x25e   :  { %v424_v12 = vpop.f32.mrb[2].mxu0 }
 0x25f   :  { %429 = vst.msk [vmem:[#allocation3] sm:$0xff] %vm428_vm2, %v422_v10  ;;  %v425_v14 = vadd.f32 %v1177_v8, %v424_v12  ;;  %v1230_v15 = vpop.f32.mrb[3].mxu0 }
 0x261   :  { %v492_v16 = vpop.f32.mrb[0].mxu1  ;;  %430 = vst.msk [vmem:[#allocation3 + $0x8] sm:$0xff] %vm428_vm2, %v425_v14 }
 0x262   :  { %v493_v17 = vadd.f32 %v2190_v13, %v492_v16  ;;  %v1237_v18 = vpop.f32.mrb[1].mxu1 }
 0x263   :  { %v495_v19 = vpop.f32.mrb[2].mxu1 }
 0x264   :  { %507 = vrot.lane.b32.xlu0 %v493_v17, %s1823_s11  ;;  %v1238_v20 = vpop.f32.mrb[3].mxu1 }
 0x266   :  { %v498_v21 = vld [vmem:[#allocation3] sm:$0x3]  ;;  %v578_v44 = vld [vmem:[#allocation3 + $0x2] sm:$0x3]  ;;  %v658_v5 = vld [vmem:[#allocation3 + $0x4] sm:$0x3] }
 0x267   :  { %v499_v22 = vadd.f32 %v498_v21, %v493_v17 }
 0x269   :  { %v1183_v23 = vmul.f32 -1.442695, %v499_v22 }
 0x26b   :  { %1325 = vpow2.f32 %v1183_v23 }
 0x275   :  { %v1326_v24 = vpop.eup %1325 }
 0x276   :  { %v503_v25 = vadd.f32 1.0, %v1326_v24 }
 0x278   :  { %1327 = vrcp.f32 %v503_v25 }
 0x282   :  { %v1328_v26 = vpop.eup %1327 }
 0x283   :  { %v517_v32 = vsub.f32 1.0, %v1328_v26  ;;  %v523_v34 = vmul.f32 0.0, %v1328_v26 }
 0x2d6   :  { %v508_v27 = vpop.permute.xlu0 %507 }
 0x2d7   :  { %v510_v28 = vmul.f32 %v1328_v26, %v508_v27 }
 0x2d9   :  { %512 = vrot.lane.b32.xlu0 %v510_v28, %s1823_s11 }
 0x34b   :  { %v513_v29 = vpop.permute.xlu0 %512 }
 0x34c   :  { %v515_v30 = vadd.f32 %v513_v29, %v498_v21 }
 0x34e   :  { %1329 = vtanh.f32 %v515_v30  ;;  %v738_v30 = vld [vmem:[#allocation3 + $0x6] sm:$0x3] }
 0x358   :  { %v1330_v31 = vpop.eup %1329 }
 0x359   :  { %519 = vrot.lane.b32.xlu1 %v1330_v31, %s1844_s4 }
 0x3cb   :  { %v520_v33 = vpop.permute.xlu1 %519 }
 0x3cc   :  { %v522_v35 = vmul.f32 %v520_v33, %v517_v32 }
 0x3ce   :  { %v2196_v36 = vadd.f32 %v523_v34, %v522_v35 }
 0x3d0   :  { %v531_v37 = vpack.c.bf16 %v2196_v36, %v2196_v36 }
 0x3d2   :  { %533 = vrot.lane.b32.xlu1 %v531_v37, %s1844_s4 }
 0x444   :  { %v534_v38 = vpop.permute.xlu1 %533 }
 0x445   :  { %1244 = vmatmul.mubr.msk.bf16.vlgmr.msra.gmra.mrb[4].mxu0 %vm454_vm3, %v534_v38 }
 0x446   :  { %1256 = vmatpush3.bf16.msra.mxu0 %v2160_v2  ;;  %1259 = vmatprep.mubr.msk.bf16.mxu0 %vm1842_vm0, %v1841_v0 }
 0x447   :  { %1257 = vmatprep.subr.bf16.mxu0 %v1841_v0 }
 0x44a   :  { %1258 = vmatpush3.bf16.msra.mxu0 %v2166_v6 }
 0x44b   :  { %1271 = vmatprep.subr.bf16.mxu0 %v1841_v0 }
 0x518   :  { %v572_v39 = vpop.f32.mrb[4].mxu0 }
 0x519   :  { %v573_v40 = vadd.f32 %v2190_v13, %v572_v39  ;;  %v1245_v41 = vpop.f32.mrb[5].mxu0 }
 0x51a   :  { %v575_v42 = vpop.f32.mrb[6].mxu0 }
 0x51b   :  { %587 = vrot.lane.b32.xlu0 %v573_v40, %s1823_s11  ;;  %v1246_v43 = vpop.f32.mrb[7].mxu0  ;;  %v579_v45 = vadd.f32 %v578_v44, %v573_v40 }
 0x51d   :  { %v1185_v46 = vmul.f32 -1.442695, %v579_v45 }
 0x51f   :  { %1331 = vpow2.f32 %v1185_v46 }
 0x529   :  { %v1332_v47 = vpop.eup %1331 }
 0x52a   :  { %v583_v48 = vadd.f32 1.0, %v1332_v47 }
 0x52c   :  { %1333 = vrcp.f32 %v583_v48 }
 0x536   :  { %v1334_v49 = vpop.eup %1333 }
 0x537   :  { %v597_v55 = vsub.f32 1.0, %v1334_v49  ;;  %v603_v57 = vmul.f32 %v1334_v49, %v2196_v36 }
 0x58d   :  { %v588_v50 = vpop.permute.xlu0 %587 }
 0x58e   :  { %v590_v51 = vmul.f32 %v1334_v49, %v588_v50 }
 0x590   :  { %592 = vrot.lane.b32.xlu1 %v590_v51, %s1823_s11 }
 0x602   :  { %v593_v52 = vpop.permute.xlu1 %592 }
 0x603   :  { %v595_v53 = vadd.f32 %v593_v52, %v578_v44 }
 0x605   :  { %1335 = vtanh.f32 %v595_v53 }
 0x60f   :  { %v1336_v54 = vpop.eup %1335 }
 0x610   :  { %599 = vrot.lane.b32.xlu0 %v1336_v54, %s1844_s4  ;;  %v818_v54 = vld [vmem:[#allocation3 + $0x8] sm:$0x3] }
 0x682   :  { %v600_v56 = vpop.permute.xlu0 %599 }
 0x683   :  { %v602_v58 = vmul.f32 %v600_v56, %v597_v55 }
 0x685   :  { %v2213_v59 = vadd.f32 %v603_v57, %v602_v58 }
 0x687   :  { %v611_v60 = vpack.c.bf16 %v2213_v59, %v2213_v59 }
 0x689   :  { %613 = vrot.lane.b32.xlu1 %v611_v60, %s1844_s4 }
 0x6fb   :  { %v614_v61 = vpop.permute.xlu1 %613 }
 0x6fc   :  { %1252 = vmatmul.mubr.msk.bf16.vlgmr.msra.gmra.mrb[4].mxu1 %vm454_vm3, %v614_v61 }
 0x6fd   :  { %1264 = vmatpush3.bf16.msra.mxu1 %v2160_v2  ;;  %1267 = vmatprep.mubr.msk.bf16.mxu1 %vm1842_vm0, %v1841_v0 }
 0x6fe   :  { %1265 = vmatprep.subr.bf16.mxu1 %v1841_v0 }
 0x701   :  { %1266 = vmatpush3.bf16.msra.mxu1 %v2166_v6 }
 0x702   :  { %1279 = vmatprep.subr.bf16.mxu1 %v1841_v0 }
 0x7cf   :  { %v652_v62 = vpop.f32.mrb[4].mxu1 }
 0x7d0   :  { %v653_v63 = vadd.f32 %v2190_v13, %v652_v62  ;;  %v1253_v1 = vpop.f32.mrb[5].mxu1 }
 0x7d1   :  { %v655_v3 = vpop.f32.mrb[6].mxu1 }
 0x7d2   :  { %667 = vrot.lane.b32.xlu0 %v653_v63, %s1823_s11  ;;  %v1254_v4 = vpop.f32.mrb[7].mxu1  ;;  %v659_v7 = vadd.f32 %v658_v5, %v653_v63 }
 0x7d4   :  { %v1187_v8 = vmul.f32 -1.442695, %v659_v7 }
 0x7d6   :  { %1337 = vpow2.f32 %v1187_v8 }
 0x7e0   :  { %v1338_v9 = vpop.eup %1337 }
 0x7e1   :  { %v663_v10 = vadd.f32 1.0, %v1338_v9 }
 0x7e3   :  { %1339 = vrcp.f32 %v663_v10 }
 0x7ed   :  { %v1340_v11 = vpop.eup %1339 }
 0x7ee   :  { %v677_v18 = vsub.f32 1.0, %v1340_v11  ;;  %v683_v20 = vmul.f32 %v1340_v11, %v2213_v59 }
 0x844   :  { %v668_v12 = vpop.permute.xlu0 %667 }
 0x845   :  { %v670_v14 = vmul.f32 %v1340_v11, %v668_v12 }
 0x847   :  { %672 = vrot.lane.b32.xlu1 %v670_v14, %s1823_s11 }
 0x8b9   :  { %v673_v15 = vpop.permute.xlu1 %672 }
 0x8ba   :  { %v675_v16 = vadd.f32 %v673_v15, %v658_v5 }
 0x8bc   :  { %1341 = vtanh.f32 %v675_v16 }
 0x8c6   :  { %v1342_v17 = vpop.eup %1341 }
 0x8c7   :  { %679 = vrot.lane.b32.xlu0 %v1342_v17, %s1844_s4 }
 0x939   :  { %v680_v19 = vpop.permute.xlu0 %679 }
 0x93a   :  { %v682_v21 = vmul.f32 %v680_v19, %v677_v18  ;;  %v898_v18 = vld [vmem:[#allocation3 + $0xa] sm:$0x3] }
 0x93c   :  { %v2230_v22 = vadd.f32 %v683_v20, %v682_v21 }
 0x93e   :  { %v691_v23 = vpack.c.bf16 %v2230_v22, %v2230_v22 }
 0x940   :  { %693 = vrot.lane.b32.xlu1 %v691_v23, %s1844_s4 }
 0x9b2   :  { %v694_v24 = vpop.permute.xlu1 %693 }
 0x9b3   :  { %1260 = vmatmul.mubr.msk.bf16.vlgmr.msra.gmra.mrb[8].mxu0 %vm454_vm3, %v694_v24 }
 0x9b4   :  { %1272 = vmatpush3.bf16.msra.mxu0 %v2160_v2  ;;  %1275 = vmatprep.mubr.msk.bf16.mxu0 %vm1842_vm0, %v1841_v0 }
 0x9b5   :  { %1273 = vmatprep.subr.bf16.mxu0 %v1841_v0 }
 0x9b8   :  { %1274 = vmatpush3.bf16.msra.mxu0 %v2166_v6 }
 0x9b9   :  { %1287 = vmatprep.subr.bf16.mxu0 %v1841_v0 }
 0xa86   :  { %v732_v25 = vpop.f32.mrb[8].mxu0 }
 0xa87   :  { %v733_v26 = vadd.f32 %v2190_v13, %v732_v25  ;;  %v1261_v27 = vpop.f32.mrb[9].mxu0 }
 0xa88   :  { %v735_v28 = vpop.f32.mrb[10].mxu0 }
 0xa89   :  { %747 = vrot.lane.b32.xlu0 %v733_v26, %s1823_s11  ;;  %v1262_v29 = vpop.f32.mrb[11].mxu0  ;;  %v739_v31 = vadd.f32 %v738_v30, %v733_v26 }
 0xa8b   :  { %v1189_v32 = vmul.f32 -1.442695, %v739_v31 }
 0xa8d   :  { %1343 = vpow2.f32 %v1189_v32 }
 0xa97   :  { %v1344_v33 = vpop.eup %1343 }
 0xa98   :  { %v743_v34 = vadd.f32 1.0, %v1344_v33 }
 0xa9a   :  { %1345 = vrcp.f32 %v743_v34 }
 0xaa4   :  { %v1346_v35 = vpop.eup %1345 }
 0xaa5   :  { %v757_v42 = vsub.f32 1.0, %v1346_v35  ;;  %v763_v44 = vmul.f32 %v1346_v35, %v2230_v22 }
 0xafb   :  { %v748_v37 = vpop.permute.xlu0 %747 }
 0xafc   :  { %v750_v38 = vmul.f32 %v1346_v35, %v748_v37 }
 0xafe   :  { %752 = vrot.lane.b32.xlu1 %v750_v38, %s1823_s11 }
 0xb70   :  { %v753_v39 = vpop.permute.xlu1 %752 }
 0xb71   :  { %v755_v40 = vadd.f32 %v753_v39, %v738_v30 }
 0xb73   :  { %1347 = vtanh.f32 %v755_v40  ;;  %v978_v40 = vld [vmem:[#allocation3 + $0xc] sm:$0x3] }
 0xb7d   :  { %v1348_v41 = vpop.eup %1347 }
 0xb7e   :  { %759 = vrot.lane.b32.xlu0 %v1348_v41, %s1844_s4 }
 0xbf0   :  { %v760_v43 = vpop.permute.xlu0 %759 }
 0xbf1   :  { %v762_v45 = vmul.f32 %v760_v43, %v757_v42 }
 0xbf3   :  { %v2247_v46 = vadd.f32 %v763_v44, %v762_v45 }
 0xbf5   :  { %v771_v47 = vpack.c.bf16 %v2247_v46, %v2247_v46 }
 0xbf7   :  { %773 = vrot.lane.b32.xlu1 %v771_v47, %s1844_s4 }
 0xc69   :  { %v774_v48 = vpop.permute.xlu1 %773 }
 0xc6a   :  { %1268 = vmatmul.mubr.msk.bf16.vlgmr.msra.gmra.mrb[8].mxu1 %vm454_vm3, %v774_v48 }
 0xc6b   :  { %1280 = vmatpush3.bf16.msra.mxu1 %v2160_v2  ;;  %1283 = vmatprep.mubr.msk.bf16.mxu1 %vm1842_vm0, %v1841_v0 }
 0xc6c   :  { %1281 = vmatprep.subr.bf16.mxu1 %v1841_v0 }
 0xc6f   :  { %1282 = vmatpush3.bf16.msra.mxu1 %v2166_v6 }
 0xd3d   :  { %v812_v49 = vpop.f32.mrb[8].mxu1 }
 0xd3e   :  { %v813_v50 = vadd.f32 %v2190_v13, %v812_v49  ;;  %v1269_v51 = vpop.f32.mrb[9].mxu1 }
 0xd3f   :  { %v815_v52 = vpop.f32.mrb[10].mxu1 }
 0xd40   :  { %827 = vrot.lane.b32.xlu0 %v813_v50, %s1823_s11  ;;  %v1270_v53 = vpop.f32.mrb[11].mxu1  ;;  %v819_v55 = vadd.f32 %v818_v54, %v813_v50 }
 0xd42   :  { %v1191_v56 = vmul.f32 -1.442695, %v819_v55 }
 0xd44   :  { %1349 = vpow2.f32 %v1191_v56 }
 0xd4e   :  { %v1350_v57 = vpop.eup %1349 }
 0xd4f   :  { %v823_v58 = vadd.f32 1.0, %v1350_v57 }
 0xd51   :  { %1351 = vrcp.f32 %v823_v58 }
 0xd5b   :  { %v1352_v60 = vpop.eup %1351 }
 0xd5c   :  { %v837_v4 = vsub.f32 1.0, %v1352_v60  ;;  %v843_v7 = vmul.f32 %v1352_v60, %v2247_v46 }
 0xdb2   :  { %v828_v61 = vpop.permute.xlu0 %827 }
 0xdb3   :  { %v830_v62 = vmul.f32 %v1352_v60, %v828_v61 }
 0xdb5   :  { %832 = vrot.lane.b32.xlu1 %v830_v62, %s1823_s11 }
 0xe27   :  { %v833_v63 = vpop.permute.xlu1 %832 }
 0xe28   :  { %v835_v1 = vadd.f32 %v833_v63, %v818_v54 }
 0xe2a   :  { %1353 = vtanh.f32 %v835_v1 }
 0xe34   :  { %v1354_v3 = vpop.eup %1353 }
 0xe35   :  { %839 = vrot.lane.b32.xlu0 %v1354_v3, %s1844_s4  ;;  %v1058_v3 = vld [vmem:[#allocation3 + $0xe] sm:$0x3] }
 0xea7   :  { %v840_v5 = vpop.permute.xlu0 %839 }
 0xea8   :  { %v842_v8 = vmul.f32 %v840_v5, %v837_v4 }
 0xeaa   :  { %v2263_v9 = vadd.f32 %v843_v7, %v842_v8 }
 0xeac   :  { %v851_v10 = vpack.c.bf16 %v2263_v9, %v2263_v9 }
 0xeae   :  { %853 = vrot.lane.b32.xlu1 %v851_v10, %s1844_s4 }
 0xf20   :  { %v854_v11 = vpop.permute.xlu1 %853 }
 0xf21   :  { %1276 = vmatmul.mubr.msk.bf16.vlgmr.msra.gmra.mrb[12].mxu0 %vm454_vm3, %v854_v11 }
 0xf22   :  { %1288 = vmatpush3.bf16.msra.mxu0 %v2160_v2  ;;  %1291 = vmatprep.mubr.msk.bf16.mxu0 %vm1842_vm0, %v1841_v0 }
 0xf23   :  { %1289 = vmatprep.subr.bf16.mxu0 %v1841_v0 }
 0xf26   :  { %1290 = vmatpush3.bf16.msra.mxu0 %v2166_v6 }
 0xff4   :  { %v892_v12 = vpop.f32.mrb[12].mxu0 }
 0xff5   :  { %v893_v14 = vadd.f32 %v2190_v13, %v892_v12  ;;  %v1277_v15 = vpop.f32.mrb[13].mxu0 }
 0xff6   :  { %v895_v16 = vpop.f32.mrb[14].mxu0 }
 0xff7   :  { %907 = vrot.lane.b32.xlu0 %v893_v14, %s1823_s11  ;;  %v1278_v17 = vpop.f32.mrb[15].mxu0  ;;  %v899_v19 = vadd.f32 %v898_v18, %v893_v14 }
 0xff9   :  { %v1193_v20 = vmul.f32 -1.442695, %v899_v19 }
 0xffb   :  { %1355 = vpow2.f32 %v1193_v20 }
0x1005   :  { %v1356_v2 = vpop.eup %1355 }
0x1006   :  { %v903_v21 = vadd.f32 1.0, %v1356_v2 }
0x1008   :  { %1357 = vrcp.f32 %v903_v21 }
0x1012   :  { %v1358_v23 = vpop.eup %1357 }
0x1013   :  { %v917_v27 = vsub.f32 1.0, %v1358_v23  ;;  %v923_v29 = vmul.f32 %v1358_v23, %v2263_v9 }
0x1069   :  { %v908_v24 = vpop.permute.xlu0 %907 }
0x106a   :  { %v910_v0 = vmul.f32 %v1358_v23, %v908_v24 }
0x106c   :  { %912 = vrot.lane.b32.xlu1 %v910_v0, %s1823_s11 }
0x10de   :  { %v913_v6 = vpop.permute.xlu1 %912 }
0x10df   :  { %v915_v25 = vadd.f32 %v913_v6, %v898_v18 }
0x10e1   :  { %1359 = vtanh.f32 %v915_v25 }
0x10eb   :  { %v1360_v26 = vpop.eup %1359 }
0x10ec   :  { %919 = vrot.lane.b32.xlu0 %v1360_v26, %s1844_s4 }
0x115e   :  { %v920_v28 = vpop.permute.xlu0 %919 }
0x115f   :  { %v922_v30 = vmul.f32 %v920_v28, %v917_v27 }
0x1161   :  { %v2279_v31 = vadd.f32 %v923_v29, %v922_v30 }
0x1163   :  { %v931_v32 = vpack.c.bf16 %v2279_v31, %v2279_v31 }
0x1165   :  { %933 = vrot.lane.b32.xlu1 %v931_v32, %s1844_s4 }
0x11d7   :  { %v934_v33 = vpop.permute.xlu1 %933 }
0x11d8   :  { %1284 = vmatmul.mubr.msk.bf16.vlgmr.msra.gmra.mrb[12].mxu1 %vm454_vm3, %v934_v33 }
0x12ab   :  { %v972_v34 = vpop.f32.mrb[12].mxu1 }
0x12ac   :  { %v973_v35 = vadd.f32 %v2190_v13, %v972_v34  ;;  %v1285_v37 = vpop.f32.mrb[13].mxu1 }
0x12ad   :  { %v975_v38 = vpop.f32.mrb[14].mxu1 }
0x12ae   :  { %987 = vrot.lane.b32.xlu0 %v973_v35, %s1823_s11  ;;  %v1286_v39 = vpop.f32.mrb[15].mxu1  ;;  %v979_v41 = vadd.f32 %v978_v40, %v973_v35 }
0x12b0   :  { %v1195_v42 = vmul.f32 -1.442695, %v979_v41 }
0x12b2   :  { %1361 = vpow2.f32 %v1195_v42 }
0x12bc   :  { %v1362_v43 = vpop.eup %1361 }
0x12bd   :  { %v983_v44 = vadd.f32 1.0, %v1362_v43 }
0x12bf   :  { %1363 = vrcp.f32 %v983_v44 }
0x12c9   :  { %v1364_v45 = vpop.eup %1363 }
0x12ca   :  { %v997_v52 = vsub.f32 1.0, %v1364_v45  ;;  %v1003_v54 = vmul.f32 %v1364_v45, %v2279_v31 }
0x1320   :  { %v988_v47 = vpop.permute.xlu0 %987 }
0x1321   :  { %v990_v48 = vmul.f32 %v1364_v45, %v988_v47 }
0x1323   :  { %992 = vrot.lane.b32.xlu1 %v990_v48, %s1823_s11 }
0x1395   :  { %v993_v49 = vpop.permute.xlu1 %992 }
0x1396   :  { %v995_v50 = vadd.f32 %v993_v49, %v978_v40 }
0x1398   :  { %1365 = vtanh.f32 %v995_v50 }
0x13a2   :  { %v1366_v51 = vpop.eup %1365 }
0x13a3   :  { %999 = vrot.lane.b32.xlu0 %v1366_v51, %s1844_s4 }
0x1415   :  { %v1000_v53 = vpop.permute.xlu0 %999 }
0x1416   :  { %v1002_v55 = vmul.f32 %v1000_v53, %v997_v52 }
0x1418   :  { %v1004_v56 = vadd.f32 %v1003_v54, %v1002_v55 }
0x141a   :  { %v1011_v57 = vpack.c.bf16 %v1004_v56, %v1004_v56 }
0x141c   :  { %1013 = vrot.lane.b32.xlu1 %v1011_v57, %s1844_s4 }
0x148e   :  { %v1014_v58 = vpop.permute.xlu1 %1013 }
0x148f   :  { %1292 = vmatmul.mubr.msk.bf16.vlgmr.msra.gmra.mrb[16].mxu0 %vm454_vm3, %v1014_v58 }
0x1562   :  { %v1052_v60 = vpop.f32.mrb[16].mxu0 }
0x1563   :  { %v1053_v61 = vadd.f32 %v2190_v13, %v1052_v60  ;;  %v1293_v62 = vpop.f32.mrb[17].mxu0 }
0x1564   :  { %v1055_v63 = vpop.f32.mrb[18].mxu0 }
0x1565   :  { %1067 = vrot.lane.b32.xlu0 %v1053_v61, %s1823_s11  ;;  %v1294_v1 = vpop.f32.mrb[19].mxu0  ;;  %v1059_v4 = vadd.f32 %v1058_v3, %v1053_v61 }
0x1567   :  { %v1197_v5 = vmul.f32 -1.442695, %v1059_v4 }
0x1569   :  { %1367 = vpow2.f32 %v1197_v5 }
0x1573   :  { %v1368_v7 = vpop.eup %1367 }
0x1574   :  { %v1063_v8 = vadd.f32 1.0, %v1368_v7 }
0x1576   :  { %1369 = vrcp.f32 %v1063_v8 }
0x1580   :  { %v1370_v10 = vpop.eup %1369 }
0x1581   :  { %v1083_v19 = vmul.f32 %v1370_v10, %v1004_v56 }
0x15d7   :  { %v1068_v11 = vpop.permute.xlu0 %1067 }
0x15d8   :  { %v1070_v12 = vmul.f32 %v1370_v10, %v1068_v11 }
0x15da   :  { %1072 = vrot.lane.b32.xlu1 %v1070_v12, %s1823_s11  ;;  %s1096_s11 = sshll.u32 %s1845_s5, 4  ;;  %s1097_s11 = int_to_ptr.vmem [resolvable:$true] %s1096_s11 }
0x15db   :  { %s1791_s25 = scalar_lea.vmem %s1097_s11, 256  ;;  %p1796_p10 = scmp.lt.s32.totalorder %s1097_s11, %s1097_s11 }
0x15dc   :  { %p1792_p9 = scmp.ne.s32.totalorder %s1097_s11, %s1791_s25  ;;  %p1797_p11 = scmp.lt.s32.totalorder %s1791_s25, %s1791_s25 }
0x15de   :  { %526 = vrot.lane.b32.xlu1 %v2196_v36, %s1844_s4  ;;  %p1798_p12 = por %p1797_p11, %p1796_p10 }
0x15e0   :  { %p1799_p13 = pnand %p1798_p12, %p1792_p9 }
0x15e2   :  { %686 = vrot.lane.b32.xlu1 %v2230_v22, %s1844_s4 }
0x15e6   :  { %846 = vrot.lane.b32.xlu1 %v2263_v9, %s1844_s4  ;;  %v1077_v9 = vsub.f32 1.0, %v1370_v10 }
0x15ea   :  { %1006 = vrot.lane.b32.xlu1 %v1004_v56, %s1844_s4 }
0x164c   :  { %v1073_v13 = vpop.permute.xlu1 %1072 }
0x164d   :  { %v1075_v14 = vadd.f32 %v1073_v13, %v1058_v3 }
0x164f   :  { %1371 = vtanh.f32 %v1075_v14 }
0x1650   :  { %v527_v15 = vpop.permute.xlu1 %526 }
0x1651   :  { %530 = vst.msk [vmem:[#allocation10] sm:$0x3] %vm529_vm4, %v527_v15 }
0x1654   :  { %v687_v16 = vpop.permute.xlu1 %686 }
0x1655   :  { %690 = vst.msk [vmem:[#allocation10 + $0x4] sm:$0x3] %vm529_vm4, %v687_v16 }
0x1658   :  { %v847_v17 = vpop.permute.xlu1 %846 }
0x1659   :  { %v1372_v36 = vpop.eup %1371  ;;  %850 = vst.msk [vmem:[#allocation10 + $0x8] sm:$0x3] %vm529_vm4, %v847_v17 }
0x165a   :  { %1079 = vrot.lane.b32.xlu0 %v1372_v36, %s1844_s4 }
0x165c   :  { %v1007_v22 = vpop.permute.xlu1 %1006 }
0x165d   :  { %1010 = vst.msk [vmem:[#allocation10 + $0xc] sm:$0x3] %vm529_vm4, %v1007_v22 }
0x165e   :  { %606 = vrot.lane.b32.xlu0 %v2213_v59, %s1844_s4 }
0x1662   :  { %766 = vrot.lane.b32.xlu0 %v2247_v46, %s1844_s4 }
0x1666   :  { %926 = vrot.lane.b32.xlu0 %v2279_v31, %s1844_s4 }
0x16cc   :  { %v1080_v18 = vpop.permute.xlu0 %1079 }
0x16cd   :  { %v1082_v20 = vmul.f32 %v1080_v18, %v1077_v9 }
0x16cf   :  { %v1084_v2 = vadd.f32 %v1083_v19, %v1082_v20 }
0x16d0   :  { %v607_v21 = vpop.permute.xlu0 %606 }
0x16d1   :  { %610 = vst.msk [vmem:[#allocation10 + $0x2] sm:$0x3] %vm529_vm4, %v607_v21  ;;  %1086 = vrot.lane.b32.xlu0 %v1084_v2, %s1844_s4 }
0x16d4   :  { %v767_v23 = vpop.permute.xlu0 %766 }
0x16d5   :  { %770 = vst.msk [vmem:[#allocation10 + $0x6] sm:$0x3] %vm529_vm4, %v767_v23 }
0x16d8   :  { %v927_v59 = vpop.permute.xlu0 %926 }
0x16d9   :  { %930 = vst.msk [vmem:[#allocation10 + $0xa] sm:$0x3] %vm529_vm4, %v927_v59 }
0x1743   :  { %v1087_v46 = vpop.permute.xlu0 %1086 }
0x1744   :  { %1090 = vst.msk [vmem:[#allocation10 + $0xe] sm:$0x3] %vm529_vm4, %v1087_v46 }
0x1745   :  { %1802 = shalt.err (!%p1799_p13)
}
0x1746   :  { %s1803_s7 = scalar_lea.hbm %s2336_s6, 256 }
0x1747   :  { %p1804_p0 = scmp.ne.s32.totalorder %s2336_s6, %s1803_s7  ;;  %p1807_p1 = scmp.lt.u32.totalorder %s1803_s7, %s2336_s6 }
0x1749   :  { %p1809_p2 = pnand %p1807_p1, %p1804_p0 }
0x174b   :  { %1812 = shalt.err (!%p1809_p2)
}
0x174c   :  { %s1846_s28 = smov 32   ;;  %s1847_s29 = smov 2  }
0x174d   :  { %1102 = dma.vmem_to_hbm [thread:$0]  %s1097_s11, 256, %s2336_s6, [#allocation9], %s1846_s28, %s1846_s28, %s1847_s29  }
0x174e   :  { %1819 = dma.done.wait [#allocation9], 256  }
0x174f   :  { %1820 = vsyncadd [#allocation9], 4294967040 }
0x1750   :  { %1106 = vsyncpa [#allocation8], 1 }
0x1751   :  { %1107 = vsyncpa [#allocation9], 1 }
0x1752   :  { %1108 = vsyncmov [#allocation4] }
0x1755   :  { %s1109_s10 = vpop.sfrf %1108 }
0x1756   :  { %p1198_p3 = scmp.ne.s32.totalorder %s1109_s10, 0 }
0x1758   :  { %1113 = shalt.err (%p1198_p3)  }

</bundles_post_ra>
